<compile_context>
chip_gen: v7x
topology: tpu7x:2x2x1
jax: 0.10.0
libtpu: 0.0.40
codegen_flags: <defaults>
</compile_context>

<pallas_src>
import jax
import jax.numpy as jnp
from jax import lax
from jax.experimental import pallas as pl
from jax.experimental.pallas import tpu as pltpu

BN_EPS = 1e-5  # nn.BatchNorm1d default


# ----------------------------------------------------------------------------
# In-kernel helpers: exact 0/1 selector matrices (built from 2-D iota compares)
# ----------------------------------------------------------------------------
def _shift_selector(N, Lin, B, s):
    """S[q, p] = 1 iff q == p + s and the source stays inside p's batch segment.

    x2d @ S  ==  x2d shifted by s along the flattened (b*Lin + l) axis with
    zero fill at each batch segment's boundary (i.e. Conv1d 'same' padding).
    """
    q = lax.broadcasted_iota(jnp.int32, (N, N), 0)
    p = lax.broadcasted_iota(jnp.int32, (N, N), 1)
    eq = q == p + s
    lo = max(0, -s)
    hi = Lin - max(0, s)
    valid = None
    for b in range(B):
        vb = jnp.logical_and(p >= b * Lin + lo, p < b * Lin + hi)
        valid = vb if valid is None else jnp.logical_or(valid, vb)
    return jnp.where(jnp.logical_and(eq, valid), 1.0, 0.0).astype(jnp.float32)


def _upsample_selector(Lin, B):
    """U[q, r] = 1 iff column r of the x2-upsampled signal copies source q."""
    N, M = B * Lin, B * 2 * Lin
    q = lax.broadcasted_iota(jnp.int32, (N, M), 0)
    r = lax.broadcasted_iota(jnp.int32, (N, M), 1)
    sel = None
    for b in range(B):
        lq = q - b * Lin
        ur = r - b * 2 * Lin
        vb = (lq >= 0) & (lq < Lin) & (ur >= 0) & (ur < 2 * Lin)
        vb = vb & (ur >= 2 * lq) & (ur <= 2 * lq + 1)
        sel = vb if sel is None else jnp.logical_or(sel, vb)
    return jnp.where(sel, 1.0, 0.0).astype(jnp.float32)


# ----------------------------------------------------------------------------
# Fused decoder kernel (single pallas_call for the whole stack)
# ----------------------------------------------------------------------------
def _make_decoder_kernel(layers_cfg, n_enc, use_upsample, B, final_enc, L_final):
    n_layers = len(layers_cfg)

    def kernel(*refs):
        x_ref = refs[0]
        enc_refs = refs[1:1 + n_enc]
        lyr_refs = refs[1 + n_enc:1 + n_enc + 3 * n_layers]
        o_ref = refs[1 + n_enc + 3 * n_layers]

        h = x_ref[...]                                     # [C0, B*L0], f32
        for i, cfg in enumerate(layers_cfg):
            w_ref = lyr_refs[3 * i]                        # [K, Cout, Ch+Ce]
            g_ref = lyr_refs[3 * i + 1]                    # [Cout, 1]
            b_ref = lyr_refs[3 * i + 2]                    # [Cout, 1]
            K, pad, Lin = cfg["K"], cfg["pad"], cfg["Lin"]
            Ch, Ce, Cout = cfg["Ch"], cfg["Ce"], cfg["Cout"]
            N = B * Lin

            # bf16 MXU operands, f32 accumulation (review: drop HIGHEST).
            hb = h.astype(jnp.bfloat16)
            eb = None
            if Ce > 0:
                eb = enc_refs[cfg["enc_idx"]][...].astype(jnp.bfloat16)

            acc = jnp.zeros((Cout, N), jnp.float32)
            for t in range(K):
                w_t = w_ref[t].astype(jnp.bfloat16)        # [Cout, Ch+Ce]
                # One matmul per tap, batch flattened onto the wide N axis.
                # The skip-concat is folded in by splitting W along Cin.
                p_t = jnp.dot(w_t[:, 0:Ch], hb,
                              preferred_element_type=jnp.float32)
                if Ce > 0:
                    p_t = p_t + jnp.dot(w_t[:, Ch:Ch + Ce], eb,
                                        preferred_element_type=jnp.float32)
                s = t - pad
                if s == 0:
                    acc = acc + p_t
                else:
                    # In-kernel 'same' padding: exact 0/1 shift selector.
                    S = _shift_selector(N, Lin, B, s)
                    acc = acc + jnp.dot(p_t, S,
                                        precision=lax.Precision.HIGHEST,
                                        preferred_element_type=jnp.float32)

            # Single-pass folded BatchNorm (training-mode batch stats over the
            # full B*Lin extent, biased variance) + ReLU.
            inv_n = 1.0 / float(N)
            s1 = jnp.sum(acc, axis=1, keepdims=True)
            s2 = jnp.sum(acc * acc, axis=1, keepdims=True)
            mean = s1 * inv_n
            var = s2 * inv_n - mean * mean
            scale = g_ref[...] * lax.rsqrt(var + BN_EPS)
            shift = b_ref[...] - mean * scale
            h = jnp.maximum(acc * scale + shift, 0.0)      # [Cout, N]

            if use_upsample:
                # nn.Upsample(scale_factor=2, mode='nearest'), in-kernel.
                U = _upsample_selector(Lin, B)             # [N, 2N], exact 0/1
                h = jnp.dot(h, U,
                            precision=lax.Precision.HIGHEST,
                            preferred_element_type=jnp.float32)

        # ---- write the output (lane-dense [C, B*L] block) ----
        if use_upsample:
            Lf = L_final
            Lp = Lf + 3                                    # F.pad(x, (2, 1))
            o_ref[...] = jnp.zeros(o_ref.shape, o_ref.dtype)
            for b in range(B):
                o_ref[:, b * Lp + 2:b * Lp + 2 + Lf] = h[:, b * Lf:(b + 1) * Lf]
        else:
            C_last = layers_cfg[-1]["Cout"]
            o_ref[0:C_last, :] = h
            if final_enc is not None:
                idx, ce_f = final_enc
                o_ref[C_last:C_last + ce_f, :] = enc_refs[idx][...]

    return kernel


# ----------------------------------------------------------------------------
# Decoder forward: mirrors the PyTorch control flow, one fused pallas_call
# ----------------------------------------------------------------------------
def decoder_forward(x_ncl, encoder_outputs_ncl, params, use_upsample=False):
    """x_ncl: [B, C, L]; encoder_outputs_ncl: list of [B, Ce, Le] (popped from end)."""
    B, C0, L0 = x_ncl.shape

    def to2d(a):  # [B, C, L] -> [C, B*L]  (API-boundary reshape only)
        Bb, Cc, Ll = a.shape
        return jnp.transpose(a, (1, 0, 2)).reshape(Cc, Bb * Ll)

    enc_stack = [jnp.asarray(e, jnp.float32) for e in encoder_outputs_ncl]
    x2d = to2d(jnp.asarray(x_ncl, jnp.float32))

    # ---- static per-layer config (mirrors the torch forward control flow) ----
    layers_cfg, enc_inputs = [], []
    final_enc = None
    pending_enc = None                 # enc folded into the NEXT conv input
    cur_C, cur_L = C0, L0
    for i, (w_kio, gamma, beta, pad) in enumerate(params):
        K, Cin_w, Cout = w_kio.shape
        if use_upsample:
            e = enc_stack.pop()
            assert e.shape[0] == B and e.shape[2] == cur_L, (e.shape, cur_L)
            enc_idx, Ce = len(enc_inputs), e.shape[1]
            enc_inputs.append(to2d(e))
        elif pending_enc is not None:
            enc_idx, Ce = pending_enc
            pending_enc = None
        else:
            enc_idx, Ce = None, 0
        assert Cin_w == cur_C + Ce, (i, Cin_w, cur_C, Ce)
        layers_cfg.append(dict(K=K, pad=pad, Lin=cur_L, Ch=cur_C, Ce=Ce,
                               Cout=Cout, enc_idx=enc_idx))
        cur_C = Cout
        if use_upsample:
            cur_L *= 2
        elif i > 0:
            e = enc_stack.pop()
            assert e.shape[0] == B and e.shape[2] == cur_L, (e.shape, cur_L)
            idx, ce2 = len(enc_inputs), e.shape[1]
            enc_inputs.append(to2d(e))
            if i == len(params) - 1:
                final_enc = (idx, ce2)
            else:
                pending_enc = (idx, ce2)

    if use_upsample:
        L_final = cur_L
        Lp = L_final + 3
        C_tot = cur_C
    else:
        L_final = cur_L
        Lp = L0
        C_tot = cur_C + (final_enc[1] if final_enc is not None else 0)

    # Layer params in the kernel's layout: W as [K, Cout, Cin], gamma/beta [Cout, 1].
    layer_args = []
    for (w_kio, gamma, beta, pad) in params:
        Cout = w_kio.shape[2]
        layer_args += [jnp.transpose(w_kio, (0, 2, 1)),
                       gamma.reshape(Cout, 1), beta.reshape(Cout, 1)]

    kernel = _make_decoder_kernel(layers_cfg, len(enc_inputs), use_upsample, B,
                                  final_enc, L_final)
    n_in = 1 + len(enc_inputs) + len(layer_args)
    out2d = pl.pallas_call(
        kernel,
        out_shape=jax.ShapeDtypeStruct((C_tot, B * Lp), jnp.float32),
        in_specs=[pl.BlockSpec(memory_space=pltpu.MemorySpace.VMEM)] * n_in,
        out_specs=pl.BlockSpec(memory_space=pltpu.MemorySpace.VMEM),
        compiler_params=pltpu.CompilerParams(vmem_limit_bytes=64 * 1024 * 1024),
    )(x2d, *enc_inputs, *layer_args)

    # [C_tot, B*Lp] -> [B, C_tot, Lp]  (back to NCL at the API boundary)
    return jnp.transpose(out2d.reshape(C_tot, B, Lp), (1, 0, 2))


# ----------------------------------------------------------------------------
# Deterministic parameter construction (resolves the Lazy conv input channels)
# ----------------------------------------------------------------------------
def build_decoder_params(key, arch, c_in, enc_channels, use_upsample):
    """arch: [(out_channels, kernel_size), ...]; enc_channels in original list order."""
    params = []
    enc_stack = list(enc_channels)
    cur = c_in
    for i, (c_out, k) in enumerate(arch):
        if use_upsample:
            cur = cur + enc_stack.pop()
        key, kw = jax.random.split(key)
        pad = (k - 1) // 2
        bound = 1.0 / float(cur * k) ** 0.5                 # torch Conv1d default init
        w = jax.random.uniform(kw, (k, cur, c_out), jnp.float32, -bound, bound)
        gamma = jnp.ones((c_out,), jnp.float32)             # BatchNorm default affine
        beta = jnp.zeros((c_out,), jnp.float32)
        params.append((w, gamma, beta, pad))
        cur = c_out
        if (not use_upsample) and i > 0:
            cur = cur + enc_stack.pop()
    return params


# ----------------------------------------------------------------------------
# Pure-JAX reference (NCL layout, full-precision conv) for validation
# ----------------------------------------------------------------------------
def decoder_reference(x, encoder_outputs, params, use_upsample):
    enc = list(encoder_outputs)
    for i, (w_kio, gamma, beta, pad) in enumerate(params):
        if use_upsample:
            x = jnp.concatenate([x, enc.pop()], axis=1)
        w_oik = jnp.transpose(w_kio, (2, 1, 0))             # [Cout, Cin, K]
        y = lax.conv_general_dilated(
            x, w_oik, window_strides=(1,), padding=[(pad, pad)],
            dimension_numbers=("NCH", "OIH", "NCH"),
            precision=lax.Precision.HIGHEST)
        mean = jnp.mean(y, axis=(0, 2), keepdims=True)
        var = jnp.mean(jnp.square(y - mean), axis=(0, 2), keepdims=True)
        y = (y - mean) * lax.rsqrt(var + BN_EPS)
        y = y * gamma[None, :, None] + beta[None, :, None]
        x = jnp.maximum(y, 0.0)
        if use_upsample:
            x = jnp.repeat(x, 2, axis=2)
        elif i > 0:
            x = jnp.concatenate([x, enc.pop()], axis=1)
    if use_upsample:
        x = jnp.pad(x, ((0, 0), (0, 0), (2, 1)))
    return x


if __name__ == "__main__":
    key = jax.random.PRNGKey(0)
    B, C_in, L = 2, 4, 16
    # Kernel uses bf16 MXU operands (f32 accumulation); reference is full f32,
    # so compare with a tolerance consistent with bf16 conv accumulation.
    TOL = dict(atol=3e-2, rtol=3e-2)

    # ---------------- use_upsample=False (default) ----------------
    arch = [(16, 3), (8, 3), (8, 5)]
    kx, ke1, ke2, kp, krest = jax.random.split(key, 5)
    x = jax.random.normal(kx, (B, C_in, L), jnp.float32)
    # encoder_outputs popped from the end: layer 1 gets [B,4,L], layer 2 gets [B,6,L]
    enc = [jax.random.normal(ke1, (B, 6, L), jnp.float32),
           jax.random.normal(ke2, (B, 4, L), jnp.float32)]
    params = build_decoder_params(kp, arch, C_in, [6, 4], use_upsample=False)

    out = jax.block_until_ready(decoder_forward(x, list(enc), params, use_upsample=False))
    ref = decoder_reference(x, list(enc), params, use_upsample=False)
    assert out.shape == ref.shape == (B, 14, L), out.shape
    assert jnp.allclose(out, ref, **TOL), float(jnp.max(jnp.abs(out - ref)))

    # ---------------- use_upsample=True ----------------
    arch_u = [(16, 3), (8, 3), (8, 3)]
    keys = jax.random.split(krest, 6)
    x_u = jax.random.normal(keys[0], (B, C_in, L), jnp.float32)
    # pop order (from end): len L at layer 0, 2L at layer 1, 4L at layer 2
    enc_u = [jax.random.normal(keys[1], (B, 5, 4 * L), jnp.float32),
             jax.random.normal(keys[2], (B, 6, 2 * L), jnp.float32),
             jax.random.normal(keys[3], (B, 3, L), jnp.float32)]
    params_u = build_decoder_params(keys[4], arch_u, C_in, [5, 6, 3], use_upsample=True)

    out_u = jax.block_until_ready(decoder_forward(x_u, list(enc_u), params_u, use_upsample=True))
    ref_u = decoder_reference(x_u, list(enc_u), params_u, use_upsample=True)
    assert out_u.shape == ref_u.shape == (B, 8, 8 * L + 3), out_u.shape
    assert jnp.allclose(out_u, ref_u, **TOL), float(jnp.max(jnp.abs(out_u - ref_u)))

    print("KERNEL_OK")
</pallas_src>

<mosaic_0001>
module attributes {stable_mosaic.version = 11 : i64} {
  func.func @kernel(%arg0: memref<4x32xf32, #tpu.memory_space<vmem>>, %arg1: memref<4x32xf32, #tpu.memory_space<vmem>>, %arg2: memref<6x32xf32, #tpu.memory_space<vmem>>, %arg3: memref<3x16x4xf32, #tpu.memory_space<vmem>>, %arg4: memref<16x1xf32, #tpu.memory_space<vmem>>, %arg5: memref<16x1xf32, #tpu.memory_space<vmem>>, %arg6: memref<3x8x16xf32, #tpu.memory_space<vmem>>, %arg7: memref<8x1xf32, #tpu.memory_space<vmem>>, %arg8: memref<8x1xf32, #tpu.memory_space<vmem>>, %arg9: memref<5x8x12xf32, #tpu.memory_space<vmem>>, %arg10: memref<8x1xf32, #tpu.memory_space<vmem>>, %arg11: memref<8x1xf32, #tpu.memory_space<vmem>>, %arg12: memref<14x32xf32, #tpu.memory_space<vmem>>) attributes {dimension_semantics = [], scalar_prefetch = 0 : i64, scratch_operands = 0 : i64, tpu.core_type = #tpu.core_type<tc>} {
    %c0 = arith.constant 0 : index
    %c0_0 = arith.constant 0 : index
    %0 = vector.load %arg0[%c0, %c0_0] : memref<4x32xf32, #tpu.memory_space<vmem>>, vector<4x32xf32>
    %1 = arith.truncf %0 : vector<4x32xf32> to vector<4x32xbf16>
    %cst = arith.constant 0.000000e+00 : f32
    %2 = vector.broadcast %cst : f32 to vector<16x32xf32>
    %c0_1 = arith.constant 0 : index
    %c0_2 = arith.constant 0 : index
    %c0_3 = arith.constant 0 : index
    %3 = vector.load %arg3[%c0_1, %c0_2, %c0_3] : memref<3x16x4xf32, #tpu.memory_space<vmem>>, vector<1x16x4xf32>
    %4 = vector.shape_cast %3 : vector<1x16x4xf32> to vector<16x4xf32>
    %5 = arith.truncf %4 : vector<16x4xf32> to vector<16x4xbf16>
    %cst_4 = arith.constant dense<0.000000e+00> : vector<16x32xf32>
    %6 = tpu.matmul %5, %1, %cst_4 {dimension_numbers = #tpu.dot_dimension_numbers<[1], [0], [0], [1], [0, 0, 1, 1], [], []>} : vector<16x4xbf16>, vector<4x32xbf16>, vector<16x32xf32> -> vector<16x32xf32>
    %7 = tpu.iota {dimensions = array<i32: 0>} : vector<32x32xi32>
    %8 = tpu.iota {dimensions = array<i32: 1>} : vector<32x32xi32>
    %c-1_i32 = arith.constant -1 : i32
    %9 = vector.broadcast %c-1_i32 : i32 to vector<32x32xi32>
    %10 = arith.addi %8, %9 : vector<32x32xi32>
    %11 = arith.cmpi eq, %7, %10 : vector<32x32xi32>
    %c1_i32 = arith.constant 1 : i32
    %12 = vector.broadcast %c1_i32 : i32 to vector<32x32xi32>
    %13 = arith.cmpi sge, %8, %12 : vector<32x32xi32>
    %c16_i32 = arith.constant 16 : i32
    %14 = vector.broadcast %c16_i32 : i32 to vector<32x32xi32>
    %15 = arith.cmpi slt, %8, %14 : vector<32x32xi32>
    %16 = arith.andi %13, %15 : vector<32x32xi1>
    %c17_i32 = arith.constant 17 : i32
    %17 = vector.broadcast %c17_i32 : i32 to vector<32x32xi32>
    %18 = arith.cmpi sge, %8, %17 : vector<32x32xi32>
    %c32_i32 = arith.constant 32 : i32
    %19 = vector.broadcast %c32_i32 : i32 to vector<32x32xi32>
    %20 = arith.cmpi slt, %8, %19 : vector<32x32xi32>
    %21 = arith.andi %18, %20 : vector<32x32xi1>
    %22 = arith.ori %16, %21 : vector<32x32xi1>
    %23 = arith.andi %11, %22 : vector<32x32xi1>
    %cst_5 = arith.constant 1.000000e+00 : f32
    %cst_6 = arith.constant 0.000000e+00 : f32
    %24 = vector.broadcast %cst_5 : f32 to vector<32x32xf32>
    %25 = vector.broadcast %cst_6 : f32 to vector<32x32xf32>
    %26 = arith.select %23, %24, %25 : vector<32x32xi1>, vector<32x32xf32>
    %cst_7 = arith.constant dense<0.000000e+00> : vector<16x32xf32>
    %27 = tpu.matmul %6, %26, %cst_7 {dimension_numbers = #tpu.dot_dimension_numbers<[1], [0], [0], [1], [0, 0, 1, 1], [], []>, precision = #tpu.contract_precision<fp32>} : vector<16x32xf32>, vector<32x32xf32>, vector<16x32xf32> -> vector<16x32xf32>
    %28 = arith.addf %2, %27 : vector<16x32xf32>
    %c1 = arith.constant 1 : index
    %c0_8 = arith.constant 0 : index
    %c0_9 = arith.constant 0 : index
    %29 = vector.load %arg3[%c1, %c0_8, %c0_9] : memref<3x16x4xf32, #tpu.memory_space<vmem>>, vector<1x16x4xf32>
    %30 = vector.shape_cast %29 : vector<1x16x4xf32> to vector<16x4xf32>
    %31 = arith.truncf %30 : vector<16x4xf32> to vector<16x4xbf16>
    %cst_10 = arith.constant dense<0.000000e+00> : vector<16x32xf32>
    %32 = tpu.matmul %31, %1, %cst_10 {dimension_numbers = #tpu.dot_dimension_numbers<[1], [0], [0], [1], [0, 0, 1, 1], [], []>} : vector<16x4xbf16>, vector<4x32xbf16>, vector<16x32xf32> -> vector<16x32xf32>
    %33 = arith.addf %28, %32 : vector<16x32xf32>
    %c2 = arith.constant 2 : index
    %c0_11 = arith.constant 0 : index
    %c0_12 = arith.constant 0 : index
    %34 = vector.load %arg3[%c2, %c0_11, %c0_12] : memref<3x16x4xf32, #tpu.memory_space<vmem>>, vector<1x16x4xf32>
    %35 = vector.shape_cast %34 : vector<1x16x4xf32> to vector<16x4xf32>
    %36 = arith.truncf %35 : vector<16x4xf32> to vector<16x4xbf16>
    %cst_13 = arith.constant dense<0.000000e+00> : vector<16x32xf32>
    %37 = tpu.matmul %36, %1, %cst_13 {dimension_numbers = #tpu.dot_dimension_numbers<[1], [0], [0], [1], [0, 0, 1, 1], [], []>} : vector<16x4xbf16>, vector<4x32xbf16>, vector<16x32xf32> -> vector<16x32xf32>
    %38 = tpu.iota {dimensions = array<i32: 0>} : vector<32x32xi32>
    %39 = tpu.iota {dimensions = array<i32: 1>} : vector<32x32xi32>
    %c1_i32_14 = arith.constant 1 : i32
    %40 = vector.broadcast %c1_i32_14 : i32 to vector<32x32xi32>
    %41 = arith.addi %39, %40 : vector<32x32xi32>
    %42 = arith.cmpi eq, %38, %41 : vector<32x32xi32>
    %c0_i32 = arith.constant 0 : i32
    %43 = vector.broadcast %c0_i32 : i32 to vector<32x32xi32>
    %44 = arith.cmpi sge, %39, %43 : vector<32x32xi32>
    %c15_i32 = arith.constant 15 : i32
    %45 = vector.broadcast %c15_i32 : i32 to vector<32x32xi32>
    %46 = arith.cmpi slt, %39, %45 : vector<32x32xi32>
    %47 = arith.andi %44, %46 : vector<32x32xi1>
    %c16_i32_15 = arith.constant 16 : i32
    %48 = vector.broadcast %c16_i32_15 : i32 to vector<32x32xi32>
    %49 = arith.cmpi sge, %39, %48 : vector<32x32xi32>
    %c31_i32 = arith.constant 31 : i32
    %50 = vector.broadcast %c31_i32 : i32 to vector<32x32xi32>
    %51 = arith.cmpi slt, %39, %50 : vector<32x32xi32>
    %52 = arith.andi %49, %51 : vector<32x32xi1>
    %53 = arith.ori %47, %52 : vector<32x32xi1>
    %54 = arith.andi %42, %53 : vector<32x32xi1>
    %cst_16 = arith.constant 1.000000e+00 : f32
    %cst_17 = arith.constant 0.000000e+00 : f32
    %55 = vector.broadcast %cst_16 : f32 to vector<32x32xf32>
    %56 = vector.broadcast %cst_17 : f32 to vector<32x32xf32>
    %57 = arith.select %54, %55, %56 : vector<32x32xi1>, vector<32x32xf32>
    %cst_18 = arith.constant dense<0.000000e+00> : vector<16x32xf32>
    %58 = tpu.matmul %37, %57, %cst_18 {dimension_numbers = #tpu.dot_dimension_numbers<[1], [0], [0], [1], [0, 0, 1, 1], [], []>, precision = #tpu.contract_precision<fp32>} : vector<16x32xf32>, vector<32x32xf32>, vector<16x32xf32> -> vector<16x32xf32>
    %59 = arith.addf %33, %58 : vector<16x32xf32>
    %cst_19 = arith.constant dense<0.000000e+00> : vector<16xf32>
    %60 = vector.multi_reduction <add>, %59, %cst_19 [1] : vector<16x32xf32> to vector<16xf32>
    %61 = vector.shape_cast %60 : vector<16xf32> to vector<16x1xf32>
    %62 = arith.mulf %59, %59 : vector<16x32xf32>
    %cst_20 = arith.constant dense<0.000000e+00> : vector<16xf32>
    %63 = vector.multi_reduction <add>, %62, %cst_20 [1] : vector<16x32xf32> to vector<16xf32>
    %64 = vector.shape_cast %63 : vector<16xf32> to vector<16x1xf32>
    %cst_21 = arith.constant 3.125000e-02 : f32
    %65 = vector.broadcast %cst_21 : f32 to vector<16x1xf32>
    %66 = arith.mulf %61, %65 : vector<16x1xf32>
    %cst_22 = arith.constant 3.125000e-02 : f32
    %67 = vector.broadcast %cst_22 : f32 to vector<16x1xf32>
    %68 = arith.mulf %64, %67 : vector<16x1xf32>
    %69 = arith.mulf %66, %66 : vector<16x1xf32>
    %70 = arith.subf %68, %69 : vector<16x1xf32>
    %c0_23 = arith.constant 0 : index
    %c0_24 = arith.constant 0 : index
    %71 = vector.load %arg4[%c0_23, %c0_24] : memref<16x1xf32, #tpu.memory_space<vmem>>, vector<16x1xf32>
    %cst_25 = arith.constant 9.99999974E-6 : f32
    %72 = vector.broadcast %cst_25 : f32 to vector<16x1xf32>
    %73 = arith.addf %70, %72 : vector<16x1xf32>
    %74 = math.rsqrt %73 : vector<16x1xf32>
    %75 = arith.mulf %71, %74 : vector<16x1xf32>
    %c0_26 = arith.constant 0 : index
    %c0_27 = arith.constant 0 : index
    %76 = vector.load %arg5[%c0_26, %c0_27] : memref<16x1xf32, #tpu.memory_space<vmem>>, vector<16x1xf32>
    %77 = arith.mulf %66, %75 : vector<16x1xf32>
    %78 = arith.subf %76, %77 : vector<16x1xf32>
    %79 = vector.broadcast %75 : vector<16x1xf32> to vector<16x32xf32>
    %80 = arith.mulf %59, %79 : vector<16x32xf32>
    %81 = vector.broadcast %78 : vector<16x1xf32> to vector<16x32xf32>
    %82 = arith.addf %80, %81 : vector<16x32xf32>
    %cst_28 = arith.constant 0.000000e+00 : f32
    %83 = vector.broadcast %cst_28 : f32 to vector<16x32xf32>
    %84 = arith.maximumf %82, %83 : vector<16x32xf32>
    %85 = arith.truncf %84 : vector<16x32xf32> to vector<16x32xbf16>
    %cst_29 = arith.constant 0.000000e+00 : f32
    %86 = vector.broadcast %cst_29 : f32 to vector<8x32xf32>
    %c0_30 = arith.constant 0 : index
    %c0_31 = arith.constant 0 : index
    %c0_32 = arith.constant 0 : index
    %87 = vector.load %arg6[%c0_30, %c0_31, %c0_32] : memref<3x8x16xf32, #tpu.memory_space<vmem>>, vector<1x8x16xf32>
    %88 = vector.shape_cast %87 : vector<1x8x16xf32> to vector<8x16xf32>
    %89 = arith.truncf %88 : vector<8x16xf32> to vector<8x16xbf16>
    %cst_33 = arith.constant dense<0.000000e+00> : vector<8x32xf32>
    %90 = tpu.matmul %89, %85, %cst_33 {dimension_numbers = #tpu.dot_dimension_numbers<[1], [0], [0], [1], [0, 0, 1, 1], [], []>} : vector<8x16xbf16>, vector<16x32xbf16>, vector<8x32xf32> -> vector<8x32xf32>
    %91 = tpu.iota {dimensions = array<i32: 0>} : vector<32x32xi32>
    %92 = tpu.iota {dimensions = array<i32: 1>} : vector<32x32xi32>
    %c-1_i32_34 = arith.constant -1 : i32
    %93 = vector.broadcast %c-1_i32_34 : i32 to vector<32x32xi32>
    %94 = arith.addi %92, %93 : vector<32x32xi32>
    %95 = arith.cmpi eq, %91, %94 : vector<32x32xi32>
    %c1_i32_35 = arith.constant 1 : i32
    %96 = vector.broadcast %c1_i32_35 : i32 to vector<32x32xi32>
    %97 = arith.cmpi sge, %92, %96 : vector<32x32xi32>
    %c16_i32_36 = arith.constant 16 : i32
    %98 = vector.broadcast %c16_i32_36 : i32 to vector<32x32xi32>
    %99 = arith.cmpi slt, %92, %98 : vector<32x32xi32>
    %100 = arith.andi %97, %99 : vector<32x32xi1>
    %c17_i32_37 = arith.constant 17 : i32
    %101 = vector.broadcast %c17_i32_37 : i32 to vector<32x32xi32>
    %102 = arith.cmpi sge, %92, %101 : vector<32x32xi32>
    %c32_i32_38 = arith.constant 32 : i32
    %103 = vector.broadcast %c32_i32_38 : i32 to vector<32x32xi32>
    %104 = arith.cmpi slt, %92, %103 : vector<32x32xi32>
    %105 = arith.andi %102, %104 : vector<32x32xi1>
    %106 = arith.ori %100, %105 : vector<32x32xi1>
    %107 = arith.andi %95, %106 : vector<32x32xi1>
    %cst_39 = arith.constant 1.000000e+00 : f32
    %cst_40 = arith.constant 0.000000e+00 : f32
    %108 = vector.broadcast %cst_39 : f32 to vector<32x32xf32>
    %109 = vector.broadcast %cst_40 : f32 to vector<32x32xf32>
    %110 = arith.select %107, %108, %109 : vector<32x32xi1>, vector<32x32xf32>
    %cst_41 = arith.constant dense<0.000000e+00> : vector<8x32xf32>
    %111 = tpu.matmul %90, %110, %cst_41 {dimension_numbers = #tpu.dot_dimension_numbers<[1], [0], [0], [1], [0, 0, 1, 1], [], []>, precision = #tpu.contract_precision<fp32>} : vector<8x32xf32>, vector<32x32xf32>, vector<8x32xf32> -> vector<8x32xf32>
    %112 = arith.addf %86, %111 : vector<8x32xf32>
    %c1_42 = arith.constant 1 : index
    %c0_43 = arith.constant 0 : index
    %c0_44 = arith.constant 0 : index
    %113 = vector.load %arg6[%c1_42, %c0_43, %c0_44] : memref<3x8x16xf32, #tpu.memory_space<vmem>>, vector<1x8x16xf32>
    %114 = vector.shape_cast %113 : vector<1x8x16xf32> to vector<8x16xf32>
    %115 = arith.truncf %114 : vector<8x16xf32> to vector<8x16xbf16>
    %cst_45 = arith.constant dense<0.000000e+00> : vector<8x32xf32>
    %116 = tpu.matmul %115, %85, %cst_45 {dimension_numbers = #tpu.dot_dimension_numbers<[1], [0], [0], [1], [0, 0, 1, 1], [], []>} : vector<8x16xbf16>, vector<16x32xbf16>, vector<8x32xf32> -> vector<8x32xf32>
    %117 = arith.addf %112, %116 : vector<8x32xf32>
    %c2_46 = arith.constant 2 : index
    %c0_47 = arith.constant 0 : index
    %c0_48 = arith.constant 0 : index
    %118 = vector.load %arg6[%c2_46, %c0_47, %c0_48] : memref<3x8x16xf32, #tpu.memory_space<vmem>>, vector<1x8x16xf32>
    %119 = vector.shape_cast %118 : vector<1x8x16xf32> to vector<8x16xf32>
    %120 = arith.truncf %119 : vector<8x16xf32> to vector<8x16xbf16>
    %cst_49 = arith.constant dense<0.000000e+00> : vector<8x32xf32>
    %121 = tpu.matmul %120, %85, %cst_49 {dimension_numbers = #tpu.dot_dimension_numbers<[1], [0], [0], [1], [0, 0, 1, 1], [], []>} : vector<8x16xbf16>, vector<16x32xbf16>, vector<8x32xf32> -> vector<8x32xf32>
    %122 = tpu.iota {dimensions = array<i32: 0>} : vector<32x32xi32>
    %123 = tpu.iota {dimensions = array<i32: 1>} : vector<32x32xi32>
    %c1_i32_50 = arith.constant 1 : i32
    %124 = vector.broadcast %c1_i32_50 : i32 to vector<32x32xi32>
    %125 = arith.addi %123, %124 : vector<32x32xi32>
    %126 = arith.cmpi eq, %122, %125 : vector<32x32xi32>
    %c0_i32_51 = arith.constant 0 : i32
    %127 = vector.broadcast %c0_i32_51 : i32 to vector<32x32xi32>
    %128 = arith.cmpi sge, %123, %127 : vector<32x32xi32>
    %c15_i32_52 = arith.constant 15 : i32
    %129 = vector.broadcast %c15_i32_52 : i32 to vector<32x32xi32>
    %130 = arith.cmpi slt, %123, %129 : vector<32x32xi32>
    %131 = arith.andi %128, %130 : vector<32x32xi1>
    %c16_i32_53 = arith.constant 16 : i32
    %132 = vector.broadcast %c16_i32_53 : i32 to vector<32x32xi32>
    %133 = arith.cmpi sge, %123, %132 : vector<32x32xi32>
    %c31_i32_54 = arith.constant 31 : i32
    %134 = vector.broadcast %c31_i32_54 : i32 to vector<32x32xi32>
    %135 = arith.cmpi slt, %123, %134 : vector<32x32xi32>
    %136 = arith.andi %133, %135 : vector<32x32xi1>
    %137 = arith.ori %131, %136 : vector<32x32xi1>
    %138 = arith.andi %126, %137 : vector<32x32xi1>
    %cst_55 = arith.constant 1.000000e+00 : f32
    %cst_56 = arith.constant 0.000000e+00 : f32
    %139 = vector.broadcast %cst_55 : f32 to vector<32x32xf32>
    %140 = vector.broadcast %cst_56 : f32 to vector<32x32xf32>
    %141 = arith.select %138, %139, %140 : vector<32x32xi1>, vector<32x32xf32>
    %cst_57 = arith.constant dense<0.000000e+00> : vector<8x32xf32>
    %142 = tpu.matmul %121, %141, %cst_57 {dimension_numbers = #tpu.dot_dimension_numbers<[1], [0], [0], [1], [0, 0, 1, 1], [], []>, precision = #tpu.contract_precision<fp32>} : vector<8x32xf32>, vector<32x32xf32>, vector<8x32xf32> -> vector<8x32xf32>
    %143 = arith.addf %117, %142 : vector<8x32xf32>
    %cst_58 = arith.constant dense<0.000000e+00> : vector<8xf32>
    %144 = vector.multi_reduction <add>, %143, %cst_58 [1] : vector<8x32xf32> to vector<8xf32>
    %145 = vector.shape_cast %144 : vector<8xf32> to vector<8x1xf32>
    %146 = arith.mulf %143, %143 : vector<8x32xf32>
    %cst_59 = arith.constant dense<0.000000e+00> : vector<8xf32>
    %147 = vector.multi_reduction <add>, %146, %cst_59 [1] : vector<8x32xf32> to vector<8xf32>
    %148 = vector.shape_cast %147 : vector<8xf32> to vector<8x1xf32>
    %cst_60 = arith.constant 3.125000e-02 : f32
    %149 = vector.broadcast %cst_60 : f32 to vector<8x1xf32>
    %150 = arith.mulf %145, %149 : vector<8x1xf32>
    %cst_61 = arith.constant 3.125000e-02 : f32
    %151 = vector.broadcast %cst_61 : f32 to vector<8x1xf32>
    %152 = arith.mulf %148, %151 : vector<8x1xf32>
    %153 = arith.mulf %150, %150 : vector<8x1xf32>
    %154 = arith.subf %152, %153 : vector<8x1xf32>
    %c0_62 = arith.constant 0 : index
    %c0_63 = arith.constant 0 : index
    %155 = vector.load %arg7[%c0_62, %c0_63] : memref<8x1xf32, #tpu.memory_space<vmem>>, vector<8x1xf32>
    %cst_64 = arith.constant 9.99999974E-6 : f32
    %156 = vector.broadcast %cst_64 : f32 to vector<8x1xf32>
    %157 = arith.addf %154, %156 : vector<8x1xf32>
    %158 = math.rsqrt %157 : vector<8x1xf32>
    %159 = arith.mulf %155, %158 : vector<8x1xf32>
    %c0_65 = arith.constant 0 : index
    %c0_66 = arith.constant 0 : index
    %160 = vector.load %arg8[%c0_65, %c0_66] : memref<8x1xf32, #tpu.memory_space<vmem>>, vector<8x1xf32>
    %161 = arith.mulf %150, %159 : vector<8x1xf32>
    %162 = arith.subf %160, %161 : vector<8x1xf32>
    %163 = vector.broadcast %159 : vector<8x1xf32> to vector<8x32xf32>
    %164 = arith.mulf %143, %163 : vector<8x32xf32>
    %165 = vector.broadcast %162 : vector<8x1xf32> to vector<8x32xf32>
    %166 = arith.addf %164, %165 : vector<8x32xf32>
    %cst_67 = arith.constant 0.000000e+00 : f32
    %167 = vector.broadcast %cst_67 : f32 to vector<8x32xf32>
    %168 = arith.maximumf %166, %167 : vector<8x32xf32>
    %169 = arith.truncf %168 : vector<8x32xf32> to vector<8x32xbf16>
    %c0_68 = arith.constant 0 : index
    %c0_69 = arith.constant 0 : index
    %170 = vector.load %arg1[%c0_68, %c0_69] : memref<4x32xf32, #tpu.memory_space<vmem>>, vector<4x32xf32>
    %171 = arith.truncf %170 : vector<4x32xf32> to vector<4x32xbf16>
    %cst_70 = arith.constant 0.000000e+00 : f32
    %172 = vector.broadcast %cst_70 : f32 to vector<8x32xf32>
    %c0_71 = arith.constant 0 : index
    %c0_72 = arith.constant 0 : index
    %c0_73 = arith.constant 0 : index
    %173 = vector.load %arg9[%c0_71, %c0_72, %c0_73] : memref<5x8x12xf32, #tpu.memory_space<vmem>>, vector<1x8x12xf32>
    %174 = vector.shape_cast %173 : vector<1x8x12xf32> to vector<8x12xf32>
    %175 = arith.truncf %174 : vector<8x12xf32> to vector<8x12xbf16>
    %176 = vector.extract_strided_slice %175 {offsets = [0, 0], sizes = [8, 8], strides = [1, 1]} : vector<8x12xbf16> to vector<8x8xbf16>
    %cst_74 = arith.constant dense<0.000000e+00> : vector<8x32xf32>
    %177 = tpu.matmul %176, %169, %cst_74 {dimension_numbers = #tpu.dot_dimension_numbers<[1], [0], [0], [1], [0, 0, 1, 1], [], []>} : vector<8x8xbf16>, vector<8x32xbf16>, vector<8x32xf32> -> vector<8x32xf32>
    %178 = vector.extract_strided_slice %175 {offsets = [0, 8], sizes = [8, 4], strides = [1, 1]} : vector<8x12xbf16> to vector<8x4xbf16>
    %cst_75 = arith.constant dense<0.000000e+00> : vector<8x32xf32>
    %179 = tpu.matmul %178, %171, %cst_75 {dimension_numbers = #tpu.dot_dimension_numbers<[1], [0], [0], [1], [0, 0, 1, 1], [], []>} : vector<8x4xbf16>, vector<4x32xbf16>, vector<8x32xf32> -> vector<8x32xf32>
    %180 = arith.addf %177, %179 : vector<8x32xf32>
    %181 = tpu.iota {dimensions = array<i32: 0>} : vector<32x32xi32>
    %182 = tpu.iota {dimensions = array<i32: 1>} : vector<32x32xi32>
    %c-2_i32 = arith.constant -2 : i32
    %183 = vector.broadcast %c-2_i32 : i32 to vector<32x32xi32>
    %184 = arith.addi %182, %183 : vector<32x32xi32>
    %185 = arith.cmpi eq, %181, %184 : vector<32x32xi32>
    %c2_i32 = arith.constant 2 : i32
    %186 = vector.broadcast %c2_i32 : i32 to vector<32x32xi32>
    %187 = arith.cmpi sge, %182, %186 : vector<32x32xi32>
    %c16_i32_76 = arith.constant 16 : i32
    %188 = vector.broadcast %c16_i32_76 : i32 to vector<32x32xi32>
    %189 = arith.cmpi slt, %182, %188 : vector<32x32xi32>
    %190 = arith.andi %187, %189 : vector<32x32xi1>
    %c18_i32 = arith.constant 18 : i32
    %191 = vector.broadcast %c18_i32 : i32 to vector<32x32xi32>
    %192 = arith.cmpi sge, %182, %191 : vector<32x32xi32>
    %c32_i32_77 = arith.constant 32 : i32
    %193 = vector.broadcast %c32_i32_77 : i32 to vector<32x32xi32>
    %194 = arith.cmpi slt, %182, %193 : vector<32x32xi32>
    %195 = arith.andi %192, %194 : vector<32x32xi1>
    %196 = arith.ori %190, %195 : vector<32x32xi1>
    %197 = arith.andi %185, %196 : vector<32x32xi1>
    %cst_78 = arith.constant 1.000000e+00 : f32
    %cst_79 = arith.constant 0.000000e+00 : f32
    %198 = vector.broadcast %cst_78 : f32 to vector<32x32xf32>
    %199 = vector.broadcast %cst_79 : f32 to vector<32x32xf32>
    %200 = arith.select %197, %198, %199 : vector<32x32xi1>, vector<32x32xf32>
    %cst_80 = arith.constant dense<0.000000e+00> : vector<8x32xf32>
    %201 = tpu.matmul %180, %200, %cst_80 {dimension_numbers = #tpu.dot_dimension_numbers<[1], [0], [0], [1], [0, 0, 1, 1], [], []>, precision = #tpu.contract_precision<fp32>} : vector<8x32xf32>, vector<32x32xf32>, vector<8x32xf32> -> vector<8x32xf32>
    %202 = arith.addf %172, %201 : vector<8x32xf32>
    %c1_81 = arith.constant 1 : index
    %c0_82 = arith.constant 0 : index
    %c0_83 = arith.constant 0 : index
    %203 = vector.load %arg9[%c1_81, %c0_82, %c0_83] : memref<5x8x12xf32, #tpu.memory_space<vmem>>, vector<1x8x12xf32>
    %204 = vector.shape_cast %203 : vector<1x8x12xf32> to vector<8x12xf32>
    %205 = arith.truncf %204 : vector<8x12xf32> to vector<8x12xbf16>
    %206 = vector.extract_strided_slice %205 {offsets = [0, 0], sizes = [8, 8], strides = [1, 1]} : vector<8x12xbf16> to vector<8x8xbf16>
    %cst_84 = arith.constant dense<0.000000e+00> : vector<8x32xf32>
    %207 = tpu.matmul %206, %169, %cst_84 {dimension_numbers = #tpu.dot_dimension_numbers<[1], [0], [0], [1], [0, 0, 1, 1], [], []>} : vector<8x8xbf16>, vector<8x32xbf16>, vector<8x32xf32> -> vector<8x32xf32>
    %208 = vector.extract_strided_slice %205 {offsets = [0, 8], sizes = [8, 4], strides = [1, 1]} : vector<8x12xbf16> to vector<8x4xbf16>
    %cst_85 = arith.constant dense<0.000000e+00> : vector<8x32xf32>
    %209 = tpu.matmul %208, %171, %cst_85 {dimension_numbers = #tpu.dot_dimension_numbers<[1], [0], [0], [1], [0, 0, 1, 1], [], []>} : vector<8x4xbf16>, vector<4x32xbf16>, vector<8x32xf32> -> vector<8x32xf32>
    %210 = arith.addf %207, %209 : vector<8x32xf32>
    %211 = tpu.iota {dimensions = array<i32: 0>} : vector<32x32xi32>
    %212 = tpu.iota {dimensions = array<i32: 1>} : vector<32x32xi32>
    %c-1_i32_86 = arith.constant -1 : i32
    %213 = vector.broadcast %c-1_i32_86 : i32 to vector<32x32xi32>
    %214 = arith.addi %212, %213 : vector<32x32xi32>
    %215 = arith.cmpi eq, %211, %214 : vector<32x32xi32>
    %c1_i32_87 = arith.constant 1 : i32
    %216 = vector.broadcast %c1_i32_87 : i32 to vector<32x32xi32>
    %217 = arith.cmpi sge, %212, %216 : vector<32x32xi32>
    %c16_i32_88 = arith.constant 16 : i32
    %218 = vector.broadcast %c16_i32_88 : i32 to vector<32x32xi32>
    %219 = arith.cmpi slt, %212, %218 : vector<32x32xi32>
    %220 = arith.andi %217, %219 : vector<32x32xi1>
    %c17_i32_89 = arith.constant 17 : i32
    %221 = vector.broadcast %c17_i32_89 : i32 to vector<32x32xi32>
    %222 = arith.cmpi sge, %212, %221 : vector<32x32xi32>
    %c32_i32_90 = arith.constant 32 : i32
    %223 = vector.broadcast %c32_i32_90 : i32 to vector<32x32xi32>
    %224 = arith.cmpi slt, %212, %223 : vector<32x32xi32>
    %225 = arith.andi %222, %224 : vector<32x32xi1>
    %226 = arith.ori %220, %225 : vector<32x32xi1>
    %227 = arith.andi %215, %226 : vector<32x32xi1>
    %cst_91 = arith.constant 1.000000e+00 : f32
    %cst_92 = arith.constant 0.000000e+00 : f32
    %228 = vector.broadcast %cst_91 : f32 to vector<32x32xf32>
    %229 = vector.broadcast %cst_92 : f32 to vector<32x32xf32>
    %230 = arith.select %227, %228, %229 : vector<32x32xi1>, vector<32x32xf32>
    %cst_93 = arith.constant dense<0.000000e+00> : vector<8x32xf32>
    %231 = tpu.matmul %210, %230, %cst_93 {dimension_numbers = #tpu.dot_dimension_numbers<[1], [0], [0], [1], [0, 0, 1, 1], [], []>, precision = #tpu.contract_precision<fp32>} : vector<8x32xf32>, vector<32x32xf32>, vector<8x32xf32> -> vector<8x32xf32>
    %232 = arith.addf %202, %231 : vector<8x32xf32>
    %c2_94 = arith.constant 2 : index
    %c0_95 = arith.constant 0 : index
    %c0_96 = arith.constant 0 : index
    %233 = vector.load %arg9[%c2_94, %c0_95, %c0_96] : memref<5x8x12xf32, #tpu.memory_space<vmem>>, vector<1x8x12xf32>
    %234 = vector.shape_cast %233 : vector<1x8x12xf32> to vector<8x12xf32>
    %235 = arith.truncf %234 : vector<8x12xf32> to vector<8x12xbf16>
    %236 = vector.extract_strided_slice %235 {offsets = [0, 0], sizes = [8, 8], strides = [1, 1]} : vector<8x12xbf16> to vector<8x8xbf16>
    %cst_97 = arith.constant dense<0.000000e+00> : vector<8x32xf32>
    %237 = tpu.matmul %236, %169, %cst_97 {dimension_numbers = #tpu.dot_dimension_numbers<[1], [0], [0], [1], [0, 0, 1, 1], [], []>} : vector<8x8xbf16>, vector<8x32xbf16>, vector<8x32xf32> -> vector<8x32xf32>
    %238 = vector.extract_strided_slice %235 {offsets = [0, 8], sizes = [8, 4], strides = [1, 1]} : vector<8x12xbf16> to vector<8x4xbf16>
    %cst_98 = arith.constant dense<0.000000e+00> : vector<8x32xf32>
    %239 = tpu.matmul %238, %171, %cst_98 {dimension_numbers = #tpu.dot_dimension_numbers<[1], [0], [0], [1], [0, 0, 1, 1], [], []>} : vector<8x4xbf16>, vector<4x32xbf16>, vector<8x32xf32> -> vector<8x32xf32>
    %240 = arith.addf %237, %239 : vector<8x32xf32>
    %241 = arith.addf %232, %240 : vector<8x32xf32>
    %c3 = arith.constant 3 : index
    %c0_99 = arith.constant 0 : index
    %c0_100 = arith.constant 0 : index
    %242 = vector.load %arg9[%c3, %c0_99, %c0_100] : memref<5x8x12xf32, #tpu.memory_space<vmem>>, vector<1x8x12xf32>
    %243 = vector.shape_cast %242 : vector<1x8x12xf32> to vector<8x12xf32>
    %244 = arith.truncf %243 : vector<8x12xf32> to vector<8x12xbf16>
    %245 = vector.extract_strided_slice %244 {offsets = [0, 0], sizes = [8, 8], strides = [1, 1]} : vector<8x12xbf16> to vector<8x8xbf16>
    %cst_101 = arith.constant dense<0.000000e+00> : vector<8x32xf32>
    %246 = tpu.matmul %245, %169, %cst_101 {dimension_numbers = #tpu.dot_dimension_numbers<[1], [0], [0], [1], [0, 0, 1, 1], [], []>} : vector<8x8xbf16>, vector<8x32xbf16>, vector<8x32xf32> -> vector<8x32xf32>
    %247 = vector.extract_strided_slice %244 {offsets = [0, 8], sizes = [8, 4], strides = [1, 1]} : vector<8x12xbf16> to vector<8x4xbf16>
    %cst_102 = arith.constant dense<0.000000e+00> : vector<8x32xf32>
    %248 = tpu.matmul %247, %171, %cst_102 {dimension_numbers = #tpu.dot_dimension_numbers<[1], [0], [0], [1], [0, 0, 1, 1], [], []>} : vector<8x4xbf16>, vector<4x32xbf16>, vector<8x32xf32> -> vector<8x32xf32>
    %249 = arith.addf %246, %248 : vector<8x32xf32>
    %250 = tpu.iota {dimensions = array<i32: 0>} : vector<32x32xi32>
    %251 = tpu.iota {dimensions = array<i32: 1>} : vector<32x32xi32>
    %c1_i32_103 = arith.constant 1 : i32
    %252 = vector.broadcast %c1_i32_103 : i32 to vector<32x32xi32>
    %253 = arith.addi %251, %252 : vector<32x32xi32>
    %254 = arith.cmpi eq, %250, %253 : vector<32x32xi32>
    %c0_i32_104 = arith.constant 0 : i32
    %255 = vector.broadcast %c0_i32_104 : i32 to vector<32x32xi32>
    %256 = arith.cmpi sge, %251, %255 : vector<32x32xi32>
    %c15_i32_105 = arith.constant 15 : i32
    %257 = vector.broadcast %c15_i32_105 : i32 to vector<32x32xi32>
    %258 = arith.cmpi slt, %251, %257 : vector<32x32xi32>
    %259 = arith.andi %256, %258 : vector<32x32xi1>
    %c16_i32_106 = arith.constant 16 : i32
    %260 = vector.broadcast %c16_i32_106 : i32 to vector<32x32xi32>
    %261 = arith.cmpi sge, %251, %260 : vector<32x32xi32>
    %c31_i32_107 = arith.constant 31 : i32
    %262 = vector.broadcast %c31_i32_107 : i32 to vector<32x32xi32>
    %263 = arith.cmpi slt, %251, %262 : vector<32x32xi32>
    %264 = arith.andi %261, %263 : vector<32x32xi1>
    %265 = arith.ori %259, %264 : vector<32x32xi1>
    %266 = arith.andi %254, %265 : vector<32x32xi1>
    %cst_108 = arith.constant 1.000000e+00 : f32
    %cst_109 = arith.constant 0.000000e+00 : f32
    %267 = vector.broadcast %cst_108 : f32 to vector<32x32xf32>
    %268 = vector.broadcast %cst_109 : f32 to vector<32x32xf32>
    %269 = arith.select %266, %267, %268 : vector<32x32xi1>, vector<32x32xf32>
    %cst_110 = arith.constant dense<0.000000e+00> : vector<8x32xf32>
    %270 = tpu.matmul %249, %269, %cst_110 {dimension_numbers = #tpu.dot_dimension_numbers<[1], [0], [0], [1], [0, 0, 1, 1], [], []>, precision = #tpu.contract_precision<fp32>} : vector<8x32xf32>, vector<32x32xf32>, vector<8x32xf32> -> vector<8x32xf32>
    %271 = arith.addf %241, %270 : vector<8x32xf32>
    %c4 = arith.constant 4 : index
    %c0_111 = arith.constant 0 : index
    %c0_112 = arith.constant 0 : index
    %272 = vector.load %arg9[%c4, %c0_111, %c0_112] : memref<5x8x12xf32, #tpu.memory_space<vmem>>, vector<1x8x12xf32>
    %273 = vector.shape_cast %272 : vector<1x8x12xf32> to vector<8x12xf32>
    %274 = arith.truncf %273 : vector<8x12xf32> to vector<8x12xbf16>
    %275 = vector.extract_strided_slice %274 {offsets = [0, 0], sizes = [8, 8], strides = [1, 1]} : vector<8x12xbf16> to vector<8x8xbf16>
    %cst_113 = arith.constant dense<0.000000e+00> : vector<8x32xf32>
    %276 = tpu.matmul %275, %169, %cst_113 {dimension_numbers = #tpu.dot_dimension_numbers<[1], [0], [0], [1], [0, 0, 1, 1], [], []>} : vector<8x8xbf16>, vector<8x32xbf16>, vector<8x32xf32> -> vector<8x32xf32>
    %277 = vector.extract_strided_slice %274 {offsets = [0, 8], sizes = [8, 4], strides = [1, 1]} : vector<8x12xbf16> to vector<8x4xbf16>
    %cst_114 = arith.constant dense<0.000000e+00> : vector<8x32xf32>
    %278 = tpu.matmul %277, %171, %cst_114 {dimension_numbers = #tpu.dot_dimension_numbers<[1], [0], [0], [1], [0, 0, 1, 1], [], []>} : vector<8x4xbf16>, vector<4x32xbf16>, vector<8x32xf32> -> vector<8x32xf32>
    %279 = arith.addf %276, %278 : vector<8x32xf32>
    %280 = tpu.iota {dimensions = array<i32: 0>} : vector<32x32xi32>
    %281 = tpu.iota {dimensions = array<i32: 1>} : vector<32x32xi32>
    %c2_i32_115 = arith.constant 2 : i32
    %282 = vector.broadcast %c2_i32_115 : i32 to vector<32x32xi32>
    %283 = arith.addi %281, %282 : vector<32x32xi32>
    %284 = arith.cmpi eq, %280, %283 : vector<32x32xi32>
    %c0_i32_116 = arith.constant 0 : i32
    %285 = vector.broadcast %c0_i32_116 : i32 to vector<32x32xi32>
    %286 = arith.cmpi sge, %281, %285 : vector<32x32xi32>
    %c14_i32 = arith.constant 14 : i32
    %287 = vector.broadcast %c14_i32 : i32 to vector<32x32xi32>
    %288 = arith.cmpi slt, %281, %287 : vector<32x32xi32>
    %289 = arith.andi %286, %288 : vector<32x32xi1>
    %c16_i32_117 = arith.constant 16 : i32
    %290 = vector.broadcast %c16_i32_117 : i32 to vector<32x32xi32>
    %291 = arith.cmpi sge, %281, %290 : vector<32x32xi32>
    %c30_i32 = arith.constant 30 : i32
    %292 = vector.broadcast %c30_i32 : i32 to vector<32x32xi32>
    %293 = arith.cmpi slt, %281, %292 : vector<32x32xi32>
    %294 = arith.andi %291, %293 : vector<32x32xi1>
    %295 = arith.ori %289, %294 : vector<32x32xi1>
    %296 = arith.andi %284, %295 : vector<32x32xi1>
    %cst_118 = arith.constant 1.000000e+00 : f32
    %cst_119 = arith.constant 0.000000e+00 : f32
    %297 = vector.broadcast %cst_118 : f32 to vector<32x32xf32>
    %298 = vector.broadcast %cst_119 : f32 to vector<32x32xf32>
    %299 = arith.select %296, %297, %298 : vector<32x32xi1>, vector<32x32xf32>
    %cst_120 = arith.constant dense<0.000000e+00> : vector<8x32xf32>
    %300 = tpu.matmul %279, %299, %cst_120 {dimension_numbers = #tpu.dot_dimension_numbers<[1], [0], [0], [1], [0, 0, 1, 1], [], []>, precision = #tpu.contract_precision<fp32>} : vector<8x32xf32>, vector<32x32xf32>, vector<8x32xf32> -> vector<8x32xf32>
    %301 = arith.addf %271, %300 : vector<8x32xf32>
    %cst_121 = arith.constant dense<0.000000e+00> : vector<8xf32>
    %302 = vector.multi_reduction <add>, %301, %cst_121 [1] : vector<8x32xf32> to vector<8xf32>
    %303 = vector.shape_cast %302 : vector<8xf32> to vector<8x1xf32>
    %304 = arith.mulf %301, %301 : vector<8x32xf32>
    %cst_122 = arith.constant dense<0.000000e+00> : vector<8xf32>
    %305 = vector.multi_reduction <add>, %304, %cst_122 [1] : vector<8x32xf32> to vector<8xf32>
    %306 = vector.shape_cast %305 : vector<8xf32> to vector<8x1xf32>
    %cst_123 = arith.constant 3.125000e-02 : f32
    %307 = vector.broadcast %cst_123 : f32 to vector<8x1xf32>
    %308 = arith.mulf %303, %307 : vector<8x1xf32>
    %cst_124 = arith.constant 3.125000e-02 : f32
    %309 = vector.broadcast %cst_124 : f32 to vector<8x1xf32>
    %310 = arith.mulf %306, %309 : vector<8x1xf32>
    %311 = arith.mulf %308, %308 : vector<8x1xf32>
    %312 = arith.subf %310, %311 : vector<8x1xf32>
    %c0_125 = arith.constant 0 : index
    %c0_126 = arith.constant 0 : index
    %313 = vector.load %arg10[%c0_125, %c0_126] : memref<8x1xf32, #tpu.memory_space<vmem>>, vector<8x1xf32>
    %cst_127 = arith.constant 9.99999974E-6 : f32
    %314 = vector.broadcast %cst_127 : f32 to vector<8x1xf32>
    %315 = arith.addf %312, %314 : vector<8x1xf32>
    %316 = math.rsqrt %315 : vector<8x1xf32>
    %317 = arith.mulf %313, %316 : vector<8x1xf32>
    %c0_128 = arith.constant 0 : index
    %c0_129 = arith.constant 0 : index
    %318 = vector.load %arg11[%c0_128, %c0_129] : memref<8x1xf32, #tpu.memory_space<vmem>>, vector<8x1xf32>
    %319 = arith.mulf %308, %317 : vector<8x1xf32>
    %320 = arith.subf %318, %319 : vector<8x1xf32>
    %321 = vector.broadcast %317 : vector<8x1xf32> to vector<8x32xf32>
    %322 = arith.mulf %301, %321 : vector<8x32xf32>
    %323 = vector.broadcast %320 : vector<8x1xf32> to vector<8x32xf32>
    %324 = arith.addf %322, %323 : vector<8x32xf32>
    %cst_130 = arith.constant 0.000000e+00 : f32
    %325 = vector.broadcast %cst_130 : f32 to vector<8x32xf32>
    %326 = arith.maximumf %324, %325 : vector<8x32xf32>
    %c0_131 = arith.constant 0 : index
    %c0_132 = arith.constant 0 : index
    %327 = vector.load %arg12[%c0_131, %c0_132] : memref<14x32xf32, #tpu.memory_space<vmem>>, vector<8x32xf32>
    tpu.vector_store %arg12[%c0_131, %c0_132], %326 {strides = array<i32>} : memref<14x32xf32, #tpu.memory_space<vmem>>, vector<8x32xf32>,
    %c0_133 = arith.constant 0 : index
    %c0_134 = arith.constant 0 : index
    %328 = vector.load %arg2[%c0_133, %c0_134] : memref<6x32xf32, #tpu.memory_space<vmem>>, vector<6x32xf32>
    %c8 = arith.constant 8 : index
    %c0_135 = arith.constant 0 : index
    %329 = vector.load %arg12[%c8, %c0_135] : memref<14x32xf32, #tpu.memory_space<vmem>>, vector<6x32xf32>
    tpu.vector_store %arg12[%c8, %c0_135], %328 {strides = array<i32>} : memref<14x32xf32, #tpu.memory_space<vmem>>, vector<6x32xf32>,
    return
  }
}

</mosaic_0001>

<bundles_post_ra>
// kernel: tpu_custom_call.1
= control target key start
LH: loop header
LB: loop body
LE: loop exit
PB: predicated region body
PF: predicated region fallthrough
CT: control target
= control target key end

     0   :  { %17 = vsyncpa [#allocation3], 0  ;;  %s7846_s0 = inlined_call_operand.hbm [shape: f32[4,32], index: 0, kind: input, shape index: {}]   ;;  %s7847_s1 = inlined_call_operand.hbm [shape: f32[4,32], index: 1, kind: input, shape index: {}]   ;;  %s7848_s2 = inlined_call_operand.hbm [shape: f32[6,32], index: 2, kind: input, shape index: {}]   ;;  %s7849_s3 = inlined_call_operand.hbm [shape: f32[3,16,4], index: 3, kind: input, shape index: {}]   ;;  %s7850_s4 = inlined_call_operand.hbm [shape: f32[16,1], index: 4, kind: input, shape index: {}]   ;;  %s7851_s5 = inlined_call_operand.hbm [shape: f32[16,1], index: 5, kind: input, shape index: {}]   ;;  %s7852_s6 = inlined_call_operand.hbm [shape: f32[3,8,16], index: 6, kind: input, shape index: {}]   ;;  %s7853_s7 = inlined_call_operand.hbm [shape: f32[8,1], index: 7, kind: input, shape index: {}]   ;;  %s7854_s8 = inlined_call_operand.hbm [shape: f32[8,1], index: 8, kind: input, shape index: {}]   ;;  %s7855_s9 = inlined_call_operand.hbm [shape: f32[5,8,12], index: 9, kind: input, shape index: {}]   ;;  %s7856_s10 = inlined_call_operand.hbm [shape: f32[8,1], index: 10, kind: input, shape index: {}]   ;;  %s7857_s11 = inlined_call_operand.hbm [shape: f32[8,1], index: 11, kind: input, shape index: {}]   ;;  %s7858_s12 = inlined_call_operand.hbm [shape: f32[14,32], index: 12, kind: output, shape index: {}]  }
   0x1   :  { %18 = vsyncpa [#allocation6], 0 }
   0x2   :  { %19 = vsyncpa [#allocation9], 0 }
   0x3   :  { %20 = vsyncpa [#allocation12], 0 }
   0x4   :  { %21 = vsyncpa [#allocation15], 0 }
   0x5   :  { %22 = vsyncpa [#allocation18], 0 }
   0x6   :  { %23 = vsyncpa [#allocation21], 0 }
   0x7   :  { %24 = vsyncpa [#allocation4], 0  ;;  %s6769_s21 = smov [#allocation5]   ;;  %s6770_s23 = smov [#allocation8]  }
   0x8   :  { %s41_s22 = sshll.u32 %s6769_s21, 4  ;;  %s60_s24 = sshll.u32 %s6770_s23, 4  ;;  %s42_s22 = int_to_ptr.vmem [resolvable:$true] %s41_s22  ;;  %s6855_s24 = int_to_ptr.vmem [resolvable:$true] %s60_s24 }
   0x9   :  { %s6467_s27 = scalar_lea.hbm %s7847_s1, 64 }
   0xa   :  { %p6468_p0 = scmp.ne.s32.totalorder %s7847_s1, %s6467_s27  ;;  %p6471_p1 = scmp.lt.u32.totalorder %s6467_s27, %s7847_s1 }
   0xc   :  { %p6473_p2 = pnand %p6471_p1, %p6468_p0 }
   0xe   :  { %6476 = shalt.err (!%p6473_p2)
}
   0xf   :  { %s6477_s14 = scalar_lea.vmem %s42_s22, 64  ;;  %p6482_p4 = scmp.lt.s32.totalorder %s42_s22, %s42_s22 }
  0x10   :  { %p6478_p3 = scmp.ne.s32.totalorder %s42_s22, %s6477_s14  ;;  %p6483_p5 = scmp.lt.s32.totalorder %s6477_s14, %s6477_s14 }
  0x12   :  { %p6484_p6 = por %p6483_p5, %p6482_p4 }
  0x14   :  { %p6485_p7 = pnand %p6484_p6, %p6478_p3 }
  0x16   :  { %6488 = shalt.err (!%p6485_p7)
}
  0x17   :  { %44 = dma.hbm_to_vmem [thread:$0]  %s7847_s1, 64, %s42_s22, [#allocation6]  }
  0x18   :  { %s6489_s19 = scalar_lea.hbm %s7849_s3, 768 }
  0x19   :  { %p6490_p8 = scmp.ne.s32.totalorder %s7849_s3, %s6489_s19  ;;  %p6493_p9 = scmp.lt.u32.totalorder %s6489_s19, %s7849_s3 }
  0x1b   :  { %p6495_p10 = pnand %p6493_p9, %p6490_p8 }
  0x1d   :  { %6498 = shalt.err (!%p6495_p10)
}
  0x1e   :  { %s6499_s26 = scalar_lea.vmem %s6855_s24, 768  ;;  %p6504_p12 = scmp.lt.s32.totalorder %s6855_s24, %s6855_s24 }
  0x1f   :  { %p6500_p11 = scmp.ne.s32.totalorder %s6855_s24, %s6499_s26  ;;  %p6505_p13 = scmp.lt.s32.totalorder %s6499_s26, %s6499_s26 }
  0x21   :  { %p6506_p0 = por %p6505_p13, %p6504_p12 }
  0x23   :  { %p6507_p1 = pnand %p6506_p0, %p6500_p11 }
  0x25   :  { %6510 = shalt.err (!%p6507_p1)
}
  0x26   :  { %s6771_s1 = smov 128   ;;  %s6772_s22 = smov 8  }
  0x27   :  { %66 = dma.hbm_to_vmem [thread:$0]  %s7849_s3, 768, %s6855_s24, [#allocation9], %s6771_s1, %s6771_s1, %s6772_s22  }
  0x28   :  { %s6773_s29 = smov [#allocation11]   ;;  %s6774_s13 = smov [#allocation14]  }
  0x29   :  { %s84_s30 = sshll.u32 %s6773_s29, 4  ;;  %s109_s14 = sshll.u32 %s6774_s13, 4  ;;  %s85_s30 = int_to_ptr.vmem [resolvable:$true] %s84_s30  ;;  %s110_s14 = int_to_ptr.vmem [resolvable:$true] %s109_s14 }
  0x2a   :  { %s6511_s17 = scalar_lea.hbm %s7851_s5, 256 }
  0x2b   :  { %p6512_p2 = scmp.ne.s32.totalorder %s7851_s5, %s6511_s17  ;;  %p6515_p3 = scmp.lt.u32.totalorder %s6511_s17, %s7851_s5 }
  0x2d   :  { %p6517_p4 = pnand %p6515_p3, %p6512_p2 }
  0x2f   :  { %6520 = shalt.err (!%p6517_p4)
}
  0x30   :  { %s6521_s3 = scalar_lea.vmem %s85_s30, 256  ;;  %p6526_p6 = scmp.lt.s32.totalorder %s85_s30, %s85_s30 }
  0x31   :  { %p6522_p5 = scmp.ne.s32.totalorder %s85_s30, %s6521_s3  ;;  %p6527_p7 = scmp.lt.s32.totalorder %s6521_s3, %s6521_s3 }
  0x33   :  { %p6528_p8 = por %p6527_p7, %p6526_p6 }
  0x35   :  { %p6529_p9 = pnand %p6528_p8, %p6522_p5 }
  0x37   :  { %6532 = shalt.err (!%p6529_p9)
}
  0x38   :  { %90 = dma.hbm_to_vmem [thread:$0]  %s7851_s5, 256, %s85_s30, [#allocation12], %s6771_s1, %s6771_s1, %s6772_s22  }
  0x39   :  { %s6533_s27 = scalar_lea.hbm %s7853_s7, 128 }
  0x3a   :  { %p6534_p10 = scmp.ne.s32.totalorder %s7853_s7, %s6533_s27  ;;  %p6537_p11 = scmp.lt.u32.totalorder %s6533_s27, %s7853_s7 }
  0x3c   :  { %p6539_p12 = pnand %p6537_p11, %p6534_p10 }
  0x3e   :  { %6542 = shalt.err (!%p6539_p12)
}
  0x3f   :  { %s6543_s16 = scalar_lea.vmem %s110_s14, 128  ;;  %p6548_p0 = scmp.lt.s32.totalorder %s110_s14, %s110_s14 }
  0x40   :  { %p6544_p13 = scmp.ne.s32.totalorder %s110_s14, %s6543_s16  ;;  %p6549_p1 = scmp.lt.s32.totalorder %s6543_s16, %s6543_s16 }
  0x42   :  { %p6550_p2 = por %p6549_p1, %p6548_p0 }
  0x44   :  { %p6551_p3 = pnand %p6550_p2, %p6544_p13 }
  0x46   :  { %6554 = shalt.err (!%p6551_p3)
}
  0x47   :  { %112 = dma.hbm_to_vmem [thread:$0]  %s7853_s7, 128, %s110_s14, [#allocation15]  }
  0x48   :  { %s6775_s17 = smov [#allocation17]   ;;  %s6776_s19 = smov [#allocation2]  }
  0x49   :  { %s128_s18 = sshll.u32 %s6775_s17, 4  ;;  %s31_s20 = sshll.u32 %s6776_s19, 4  ;;  %s129_s18 = int_to_ptr.vmem [resolvable:$true] %s128_s18  ;;  %s32_s20 = int_to_ptr.vmem [resolvable:$true] %s31_s20 }
  0x4a   :  { %s6555_s24 = scalar_lea.hbm %s7855_s9, 640 }
  0x4b   :  { %p6556_p4 = scmp.ne.s32.totalorder %s7855_s9, %s6555_s24  ;;  %p6559_p5 = scmp.lt.u32.totalorder %s6555_s24, %s7855_s9 }
  0x4d   :  { %p6561_p6 = pnand %p6559_p5, %p6556_p4 }
  0x4f   :  { %6564 = shalt.err (!%p6561_p6)
}
  0x50   :  { %s6565_s7 = scalar_lea.vmem %s129_s18, 640  ;;  %p6570_p8 = scmp.lt.s32.totalorder %s129_s18, %s129_s18 }
  0x51   :  { %p6566_p7 = scmp.ne.s32.totalorder %s129_s18, %s6565_s7  ;;  %p6571_p9 = scmp.lt.s32.totalorder %s6565_s7, %s6565_s7 }
  0x53   :  { %p6572_p10 = por %p6571_p9, %p6570_p8 }
  0x55   :  { %p6573_p11 = pnand %p6572_p10, %p6566_p7 }
  0x57   :  { %6576 = shalt.err (!%p6573_p11)
}
  0x58   :  { %134 = dma.hbm_to_vmem [thread:$0]  %s7855_s9, 640, %s129_s18, [#allocation18], %s6771_s1, %s6771_s1, %s6772_s22  }
  0x59   :  { %s6577_s15 = scalar_lea.hbm %s7846_s0, 64 }
  0x5a   :  { %p6578_p12 = scmp.ne.s32.totalorder %s7846_s0, %s6577_s15  ;;  %p6581_p13 = scmp.lt.u32.totalorder %s6577_s15, %s7846_s0 }
  0x5c   :  { %p6583_p0 = pnand %p6581_p13, %p6578_p12 }
  0x5e   :  { %6586 = shalt.err (!%p6583_p0)
}
  0x5f   :  { %s6587_s19 = scalar_lea.vmem %s32_s20, 64  ;;  %p6592_p2 = scmp.lt.s32.totalorder %s32_s20, %s32_s20 }
  0x60   :  { %p6588_p1 = scmp.ne.s32.totalorder %s32_s20, %s6587_s19  ;;  %p6593_p3 = scmp.lt.s32.totalorder %s6587_s19, %s6587_s19 }
  0x62   :  { %p6594_p4 = por %p6593_p3, %p6592_p2 }
  0x64   :  { %p6595_p5 = pnand %p6594_p4, %p6588_p1 }
  0x66   :  { %6598 = shalt.err (!%p6595_p5)
}
  0x67   :  { %34 = dma.hbm_to_vmem [thread:$0]  %s7846_s0, 64, %s32_s20, [#allocation3]  }
  0x68   :  { %s6777_s21 = smov [#allocation7]   ;;  %s6778_s24 = smov [#allocation10]  }
  0x69   :  { %s51_s3 = sshll.u32 %s6777_s21, 4  ;;  %s72_s23 = sshll.u32 %s6778_s24, 4  ;;  %s52_s3 = int_to_ptr.vmem [resolvable:$true] %s51_s3  ;;  %s6943_s23 = int_to_ptr.vmem [resolvable:$true] %s72_s23 }
  0x6a   :  { %s6599_s27 = scalar_lea.hbm %s7848_s2, 128 }
  0x6b   :  { %p6600_p6 = scmp.ne.s32.totalorder %s7848_s2, %s6599_s27  ;;  %p6603_p7 = scmp.lt.u32.totalorder %s6599_s27, %s7848_s2 }
  0x6d   :  { %p6605_p8 = pnand %p6603_p7, %p6600_p6 }
  0x6f   :  { %6608 = shalt.err (!%p6605_p8)
}
  0x70   :  { %s6609_s0 = scalar_lea.vmem %s52_s3, 128  ;;  %p6614_p10 = scmp.lt.s32.totalorder %s52_s3, %s52_s3 }
  0x71   :  { %p6610_p9 = scmp.ne.s32.totalorder %s52_s3, %s6609_s0  ;;  %p6615_p11 = scmp.lt.s32.totalorder %s6609_s0, %s6609_s0 }
  0x73   :  { %p6616_p12 = por %p6615_p11, %p6614_p10 }
  0x75   :  { %p6617_p13 = pnand %p6616_p12, %p6610_p9 }
  0x77   :  { %6620 = shalt.err (!%p6617_p13)
}
  0x78   :  { %54 = dma.hbm_to_vmem [thread:$0]  %s7848_s2, 128, %s52_s3, [#allocation6]  }
  0x79   :  { %s6621_s5 = scalar_lea.hbm %s7850_s4, 256 }
  0x7a   :  { %p6622_p0 = scmp.ne.s32.totalorder %s7850_s4, %s6621_s5  ;;  %p6625_p1 = scmp.lt.u32.totalorder %s6621_s5, %s7850_s4 }
  0x7c   :  { %p6627_p2 = pnand %p6625_p1, %p6622_p0 }
  0x7e   :  { %6630 = shalt.err (!%p6627_p2)
}
  0x7f   :  { %s6631_s18 = scalar_lea.vmem %s6943_s23, 256  ;;  %p6636_p4 = scmp.lt.s32.totalorder %s6943_s23, %s6943_s23 }
  0x80   :  { %p6632_p3 = scmp.ne.s32.totalorder %s6943_s23, %s6631_s18  ;;  %p6637_p5 = scmp.lt.s32.totalorder %s6631_s18, %s6631_s18 }
  0x82   :  { %p6638_p6 = por %p6637_p5, %p6636_p4 }
  0x84   :  { %p6639_p7 = pnand %p6638_p6, %p6632_p3 }
  0x86   :  { %6642 = shalt.err (!%p6639_p7)
}
  0x87   :  { %78 = dma.hbm_to_vmem [thread:$0]  %s7850_s4, 256, %s6943_s23, [#allocation9], %s6771_s1, %s6771_s1, %s6772_s22  }
  0x88   :  { %s6779_s3 = smov [#allocation13]   ;;  %s6780_s25 = smov [#allocation16]  }
  0x89   :  { %s96_s24 = sshll.u32 %s6779_s3, 4  ;;  %s119_s26 = sshll.u32 %s6780_s25, 4  ;;  %s97_s24 = int_to_ptr.vmem [resolvable:$true] %s96_s24  ;;  %s120_s26 = int_to_ptr.vmem [resolvable:$true] %s119_s26 }
  0x8a   :  { %s6643_s14 = scalar_lea.hbm %s7852_s6, 384 }
  0x8b   :  { %p6644_p8 = scmp.ne.s32.totalorder %s7852_s6, %s6643_s14  ;;  %p6647_p9 = scmp.lt.u32.totalorder %s6643_s14, %s7852_s6 }
  0x8d   :  { %p6649_p10 = pnand %p6647_p9, %p6644_p8 }
  0x8f   :  { %6652 = shalt.err (!%p6649_p10)
}
  0x90   :  { %s6653_s4 = scalar_lea.vmem %s97_s24, 384  ;;  %p6658_p12 = scmp.lt.s32.totalorder %s97_s24, %s97_s24 }
  0x91   :  { %p6654_p11 = scmp.ne.s32.totalorder %s97_s24, %s6653_s4  ;;  %p6659_p13 = scmp.lt.s32.totalorder %s6653_s4, %s6653_s4 }
  0x93   :  { %p6660_p0 = por %p6659_p13, %p6658_p12 }
  0x95   :  { %p6661_p1 = pnand %p6660_p0, %p6654_p11 }
  0x97   :  { %6664 = shalt.err (!%p6661_p1)
}
  0x98   :  { %102 = dma.hbm_to_vmem [thread:$0]  %s7852_s6, 384, %s97_s24, [#allocation12], %s6771_s1, %s6771_s1, %s6772_s22  }
  0x99   :  { %s6665_s5 = scalar_lea.hbm %s7854_s8, 128 }
  0x9a   :  { %p6666_p2 = scmp.ne.s32.totalorder %s7854_s8, %s6665_s5  ;;  %p6669_p3 = scmp.lt.u32.totalorder %s6665_s5, %s7854_s8 }
  0x9c   :  { %p6671_p4 = pnand %p6669_p3, %p6666_p2 }
  0x9e   :  { %6674 = shalt.err (!%p6671_p4)
}
  0x9f   :  { %s6675_s18 = scalar_lea.vmem %s120_s26, 128  ;;  %p6680_p6 = scmp.lt.s32.totalorder %s120_s26, %s120_s26 }
  0xa0   :  { %p6676_p5 = scmp.ne.s32.totalorder %s120_s26, %s6675_s18  ;;  %p6681_p7 = scmp.lt.s32.totalorder %s6675_s18, %s6675_s18 }
  0xa2   :  { %p6682_p8 = por %p6681_p7, %p6680_p6 }
  0xa4   :  { %p6683_p9 = pnand %p6682_p8, %p6676_p5 }
  0xa6   :  { %6686 = shalt.err (!%p6683_p9)
}
  0xa7   :  { %122 = dma.hbm_to_vmem [thread:$0]  %s7854_s8, 128, %s120_s26, [#allocation15]  }
  0xa8   :  { %s6781_s21 = smov [#allocation19]   ;;  %s6782_s24 = smov [#allocation20]  }
  0xa9   :  { %s141_s3 = sshll.u32 %s6781_s21, 4  ;;  %s151_s25 = sshll.u32 %s6782_s24, 4  ;;  %s142_s3 = int_to_ptr.vmem [resolvable:$true] %s141_s3  ;;  %s152_s25 = int_to_ptr.vmem [resolvable:$true] %s151_s25 }
  0xaa   :  { %s6687_s14 = scalar_lea.hbm %s7856_s10, 128 }
  0xab   :  { %p6688_p10 = scmp.ne.s32.totalorder %s7856_s10, %s6687_s14  ;;  %p6691_p11 = scmp.lt.u32.totalorder %s6687_s14, %s7856_s10 }
  0xad   :  { %p6693_p12 = pnand %p6691_p11, %p6688_p10 }
  0xaf   :  { %6696 = shalt.err (!%p6693_p12)
}
  0xb0   :  { %s6697_s8 = scalar_lea.vmem %s142_s3, 128  ;;  %p6702_p0 = scmp.lt.s32.totalorder %s142_s3, %s142_s3 }
  0xb1   :  { %p6698_p13 = scmp.ne.s32.totalorder %s142_s3, %s6697_s8  ;;  %p6703_p1 = scmp.lt.s32.totalorder %s6697_s8, %s6697_s8 }
  0xb3   :  { %p6704_p2 = por %p6703_p1, %p6702_p0 }
  0xb5   :  { %p6705_p3 = pnand %p6704_p2, %p6698_p13 }
  0xb7   :  { %6708 = shalt.err (!%p6705_p3)
}
  0xb8   :  { %144 = dma.hbm_to_vmem [thread:$0]  %s7856_s10, 128, %s142_s3, [#allocation18]  }
  0xb9   :  { %s6709_s15 = scalar_lea.hbm %s7857_s11, 128 }
  0xba   :  { %p6710_p4 = scmp.ne.s32.totalorder %s7857_s11, %s6709_s15  ;;  %p6713_p5 = scmp.lt.u32.totalorder %s6709_s15, %s7857_s11 }
  0xbc   :  { %p6715_p6 = pnand %p6713_p5, %p6710_p4 }
  0xbe   :  { %6718 = shalt.err (!%p6715_p6)
}
  0xbf   :  { %s6719_s19 = scalar_lea.vmem %s152_s25, 128  ;;  %p6724_p8 = scmp.lt.s32.totalorder %s152_s25, %s152_s25 }
  0xc0   :  { %p6720_p7 = scmp.ne.s32.totalorder %s152_s25, %s6719_s19  ;;  %p6725_p9 = scmp.lt.s32.totalorder %s6719_s19, %s6719_s19 }
  0xc2   :  { %p6726_p10 = por %p6725_p9, %p6724_p8 }
  0xc4   :  { %p6727_p11 = pnand %p6726_p10, %p6720_p7 }
  0xc6   :  { %6730 = shalt.err (!%p6727_p11)
}
  0xc7   :  { %154 = dma.hbm_to_vmem [thread:$0]  %s7857_s11, 128, %s152_s25, [#allocation21]  }
  0xc8   :  { %6753 = dma.done.wait [#allocation3], 64  }
  0xc9   :  { %6754 = vsyncadd [#allocation3], 4294967232 }
  0xca   :  { %6755 = dma.done.wait [#allocation6], 192  }
  0xcb   :  { %6756 = vsyncadd [#allocation6], 4294967104 }
  0xcc   :  { %6757 = dma.done.wait [#allocation9], 1024  }
  0xcd   :  { %6758 = vsyncadd [#allocation9], 4294966272 }
  0xce   :  { %6759 = dma.done.wait [#allocation12], 640  }
  0xcf   :  { %6760 = vsyncadd [#allocation12], 4294966656 }
  0xd0   :  { %6761 = dma.done.wait [#allocation15], 256  }
  0xd1   :  { %6762 = vsyncadd [#allocation15], 4294967040 }
  0xd2   :  { %6763 = dma.done.wait [#allocation18], 768  }
  0xd3   :  { %6764 = vsyncadd [#allocation18], 4294966528 }
  0xd4   :  { %6765 = dma.done.wait [#allocation21], 128  }
  0xd5   :  { %6766 = vsyncadd [#allocation21], 4294967168  ;;  %v6783_v0 = vmov 0.0   ;;  %vm6784_vm0 = vmmov 0   ;;  %v246_v1 = vlaneseq  ;;  %v192_v6 = vld [vmem:[#allocation2] sm:$0xf] }
  0xd6   :  { %5392 = vmatprep.subr.bf16.mxu1 %v6783_v0  ;;  %5394 = vmatprep.mubr.msk.bf16.mxu1 %vm6784_vm0, %v6783_v0  ;;  %vm201_vm5 = vcmask 1041408   ;;  %v194_v7 = vld [vmem:[#allocation8] sm:$0xff]  ;;  %v193_v8 = vpack.c.bf16 %v192_v6, %v192_v6  ;;  %v195_v9 = vld [vmem:[#allocation8 + $0x8] sm:$0xff]  ;;  %vm197_vm11 = vcmask 31744   ;;  %v274_v18 = vld [vmem:[#allocation8 + $0x10] sm:$0xff]  ;;  %s6788_s11 = smov 120  }
  0xd7   :  { %v7031_v2 = vshrl.u32 %v246_v1, 7  ;;  %v7033_v3 = vand.u32 127, %v246_v1  ;;  %v196_v11 = vpack.c.bf16 %v195_v9, %v194_v7  ;;  %v275_v19 = vld [vmem:[#allocation8 + $0x18] sm:$0xff]  ;;  %v6785_v44 = vmov 1.0|1.0   ;;  %s6789_s18 = smov [#allocation22]  }
  0xd8   :  { %v7050_v10 = vsel %vm201_vm5, %v193_v8, 0  ;;  %v276_v23 = vpack.c.bf16 %v275_v19, %v274_v18  ;;  %s4978_s6 = sshll.u32 %s6789_s18, 4  ;;  %s4979_s6 = int_to_ptr.vmem [resolvable:$true] %s4978_s6 }
  0xd9   :  { %v7036_v4 = vadd.s32 8, %v7031_v2  ;;  %v253_v5 = vadd.s32 4294967295, %v7033_v3  ;;  %vm258_vm1 = vcmp.ge.s32.totalorder %v7033_v3, 1  ;;  %vm259_vm2 = vcmp.lt.s32.totalorder %v7033_v3, 16  ;;  %5393 = vmatpush3.bf16.msra.mxu1 %v7050_v10  ;;  %s6731_s2 = scalar_lea.vmem %s4979_s6, 256  ;;  %p6736_p13 = scmp.lt.s32.totalorder %s4979_s6, %s4979_s6 }
  0xda   :  { %vm261_vm3 = vcmp.ge.s32.totalorder %v7033_v3, 17  ;;  %vm262_vm4 = vcmp.lt.s32.totalorder %v7033_v3, 32  ;;  %vm260_vm6 = vmand %vm258_vm1, %vm259_vm2  ;;  %5398 = vmatprep.subr.bf16.mxu1 %v6783_v0  ;;  %v7090_v28 = vadd.s32 16, %v7031_v2  ;;  %v7093_v29 = vadd.s32 24, %v7031_v2  ;;  %p6732_p12 = scmp.ne.s32.totalorder %s4979_s6, %s6731_s2  ;;  %p6737_p0 = scmp.lt.s32.totalorder %s6731_s2, %s6731_s2 }
  0xdb   :  { %vm254_vm7 = vcmp.eq.s32.totalorder %v7031_v2, %v253_v5  ;;  %vm255_vm8 = vcmp.eq.s32.totalorder %v7036_v4, %v253_v5  ;;  %vm263_vm9 = vmand %vm261_vm3, %vm262_vm4  ;;  %v880_v9 = vadd.s32 1, %v7033_v3 }
  0xdc   :  { %vm7052_vm10 = vmor %vm260_vm6, %vm263_vm9  ;;  %5395 = vmatmul.mubr.msk.bf16.vlgmr.msra.gmra.mrb[0].mxu1 %vm197_vm11, %v196_v11  ;;  %vm256_vm15 = vcmp.eq.s32.totalorder %v7090_v28, %v253_v5  ;;  %vm257_vm1 = vcmp.eq.s32.totalorder %v7093_v29, %v253_v5  ;;  %vm7859_vm9 = vcmp.ge.s32.totalorder %v7033_v3, 16  ;;  %p6738_p1 = por %p6737_p0, %p6736_p13 }
  0xdd   :  { %vm265_vm12 = vmand %vm254_vm7, %vm7052_vm10  ;;  %5399 = vmatpush3.bf16.msra.mxu1 %v7050_v10  ;;  %5400 = vmatprep.mubr.msk.bf16.mxu1 %vm6784_vm0, %v6783_v0 }
  0xde   :  { %vm266_vm13 = vmand %vm255_vm8, %vm7052_vm10  ;;  %v269_v13 = vsel %vm265_vm12, 1.0, %v6783_v0  ;;  %vm321_vm8 = vcmask 261120   ;;  %p6739_p2 = pnand %p6738_p1, %p6732_p12 }
  0xdf   :  { %v270_v14 = vsel %vm266_vm13, 1.0, %v6783_v0  ;;  %vm7064_vm14 = vmpackc.low %vm266_vm13, %vm265_vm12  ;;  %v7068_v16 = vsub.f32 %v269_v13, %v269_v13  ;;  %vm886_vm12 = vcmp.lt.s32.totalorder %v7033_v3, 15  ;;  %v833_v13 = vld [vmem:[#allocation8 + $0x20] sm:$0xff] }
  0xe0   :  { %v7071_v17 = vsub.f32 %v270_v14, %v270_v14  ;;  %vm7099_vm3 = vmand %vm256_vm15, %vm7052_vm10  ;;  %6017 = vmatprep.subr.msk.bf16.mxu0 %vm7064_vm14, %v6785_v44  ;;  %vm881_vm15 = vcmp.eq.s32.totalorder %v7031_v2, %v880_v9  ;;  %v834_v14 = vld [vmem:[#allocation8 + $0x28] sm:$0xff] }
  0xe1   :  { %v415_v20 = vand.u32 4294901760, %v7068_v16  ;;  %vm7105_vm6 = vmand %vm257_vm1, %vm7052_vm10  ;;  %v271_v32 = vsel %vm7099_vm3, 1.0, %v6783_v0  ;;  %6019 = vmatpush3.bf16.msk.msra.mxu0 %vm7064_vm14, %v6785_v44  ;;  %vm889_vm10 = vcmp.lt.s32.totalorder %v7033_v3, 31  ;;  %v835_v18 = vpack.c.bf16 %v834_v14, %v833_v13 }
  0xe2   :  { %v421_v21 = vand.u32 4294901760, %v7071_v17  ;;  %v272_v33 = vsel %vm7105_vm6, 1.0, %v6783_v0  ;;  %v426_v34 = vsub.f32 %v271_v32, %v271_v32  ;;  %v7121_v43 = vpack.c.bf16 %v7071_v17, %v7068_v16  ;;  %vm7134_vm7 = vmpackc.low %vm7105_vm6, %vm7099_vm3 }
  0xe3   :  { %v416_v22 = vsub.f32 %v7068_v16, %v415_v20  ;;  %v432_v35 = vsub.f32 %v272_v33, %v272_v33  ;;  %6021 = vmatprep.subr.msk.bf16.mxu0 %vm7134_vm7, %v6785_v44  ;;  %vm890_vm13 = vmand %vm7859_vm9, %vm889_vm10  ;;  %vm882_vm3 = vcmp.eq.s32.totalorder %v7036_v4, %v880_v9 }
  0xe4   :  { %v422_v24 = vsub.f32 %v7071_v17, %v421_v21  ;;  %5401 = vmatmul.mubr.msk.bf16.vlgmr.msra.gmra.mrb[4].mxu1 %vm197_vm11, %v276_v23  ;;  %v427_v36 = vand.u32 4294901760, %v426_v34  ;;  %v7171_v8 = vpack.c.bf16 %v421_v21, %v415_v20  ;;  %vm7195_vm1 = vmor %vm886_vm12, %vm890_vm13  ;;  %vm883_vm12 = vcmp.eq.s32.totalorder %v7090_v28, %v880_v9 }
  0xe5   :  { %v417_v25 = vand.u32 4294901760, %v416_v22  ;;  %v433_v37 = vand.u32 4294901760, %v432_v35  ;;  %v7138_v46 = vpack.c.bf16 %v432_v35, %v426_v34  ;;  %6023 = vmatpush3.bf16.msk.msra.mxu0 %vm7134_vm7, %v6785_v44  ;;  %vm7205_vm6 = vmand %vm881_vm15, %vm7195_vm1  ;;  %vm884_vm15 = vcmp.eq.s32.totalorder %v7093_v29, %v880_v9 }
  0xe6   :  { %v423_v26 = vand.u32 4294901760, %v422_v24  ;;  %v428_v38 = vsub.f32 %v426_v34, %v427_v36  ;;  %5548 = vmatprep.subr.bf16.mxu0 %v6783_v0  ;;  %vm7214_vm10 = vmand %vm882_vm3, %vm7195_vm1 }
  0xe7   :  { %v434_v39 = vsub.f32 %v432_v35, %v433_v37  ;;  %v7147_v47 = vpack.c.bf16 %v433_v37, %v427_v36  ;;  %vm7224_vm13 = vmpackc.low %vm7214_vm10, %vm7205_vm6  ;;  %v897_v22 = vsel %vm7214_vm10, 1.0, %v6783_v0  ;;  %vm2682_vm10 = vcmp.ge.s32.totalorder %v7033_v3, 18 }
  0xe8   :  { %v7085_v27 = vpack.c.bf16 %v423_v26, %v417_v25  ;;  %v429_v40 = vand.u32 4294901760, %v428_v38  ;;  %vm7231_vm3 = vmand %vm883_vm12, %vm7195_vm1  ;;  %v998_v24 = vsub.f32 %v897_v22, %v897_v22 }
  0xe9   :  { %v435_v41 = vand.u32 4294901760, %v434_v39  ;;  %vm7240_vm9 = vmand %vm884_vm15, %vm7195_vm1  ;;  %vm2627_vm1 = vcmask 64512  }
  0xea   :  { %6025 = vmatprep.subr.bf16.mxu1 %v7085_v27  ;;  %vm7251_vm12 = vmpackc.low %vm7240_vm9, %vm7231_vm3  ;;  %v999_v26 = vand.u32 4294901760, %v998_v24 }
  0xeb   :  { %6027 = vmatpush3.bf16.msra.mxu1 %v7085_v27  ;;  %v7115_v42 = vpack.c.bf16 %v435_v41, %v429_v40  ;;  %v898_v41 = vsel %vm7231_vm3, 1.0, %v6783_v0  ;;  %vm2683_vm3 = vmand %vm2682_vm10, %vm262_vm4 }
  0xec   :  { %v1000_v31 = vsub.f32 %v998_v24, %v999_v26 }
  0xed   :  { %6029 = vmatprep.subr.bf16.mxu1 %v7115_v42 }
  0xee   :  { %v1001_v33 = vand.u32 4294901760, %v1000_v31 }
  0xef   :  { %6031 = vmatpush3.bf16.msra.mxu1 %v7115_v42 }
  0xf0   :  { %6033 = vmatprep.subr.bf16.mxu1 %v7121_v43 }
 0x1af   :  { %v239_v48 = vpop.f32.mrb[0].mxu1 }
 0x1b0   :  { %v323_v49 = vsel %vm321_vm8, %v239_v48, 0  ;;  %v5396_v50 = vpop.f32.mrb[1].mxu1  ;;  %v899_v48 = vsel %vm7240_vm9, 1.0, %v6783_v0  ;;  %vm1477_vm9 = vcmask 130048  }
 0x1b1   :  { %v393_v51 = vand.u32 4294901760, %v323_v49  ;;  %v242_v52 = vpop.f32.mrb[2].mxu1  ;;  %v1010_v50 = vsub.f32 %v899_v48, %v899_v48 }
 0x1b2   :  { %v326_v53 = vsel %vm321_vm8, %v242_v52, 0  ;;  %v5397_v54 = vpop.f32.mrb[3].mxu1 }
 0x1b3   :  { %v394_v55 = vsub.f32 %v323_v49, %v393_v51  ;;  %v403_v56 = vand.u32 4294901760, %v326_v53  ;;  %5423 = vmatprep.mubr.f32.mxu1 %v393_v51  ;;  %v1004_v49 = vsub.f32 %v898_v41, %v898_v41 }
 0x1b5   :  { %v404_v57 = vsub.f32 %v326_v53, %v403_v56  ;;  %5424 = vmatmul.mubr.f32.vlgmr.msra.gmra.mrb[8].mxu1 %v403_v56  ;;  %v395_v58 = vand.u32 4294901760, %v394_v55  ;;  %v1005_v52 = vand.u32 4294901760, %v1004_v49  ;;  %v1011_v53 = vand.u32 4294901760, %v1010_v50 }
 0x1b6   :  { %6035 = vmatpush3.bf16.msra.mxu1 %v7121_v43  ;;  %5434 = vmatprep.mubr.f32.mxu1 %v394_v55 }
 0x1b7   :  { %v405_v59 = vand.u32 4294901760, %v404_v57  ;;  %6037 = vmatprep.subr.bf16.mxu1 %v7138_v46  ;;  %v396_v60 = vsub.f32 %v394_v55, %v395_v58  ;;  %v7153_v61 = vpop.f32.mrb[4].mxu1  ;;  %v7316_v19 = vpack.c.bf16 %v1011_v53, %v1005_v52 }
 0x1b8   :  { %v5402_v62 = vpop.f32.mrb[5].mxu1 }
 0x1b9   :  { %v397_v63 = vand.u32 4294901760, %v396_v60  ;;  %v406_v1 = vsub.f32 %v404_v57, %v405_v59  ;;  %v7155_v5 = vpop.f32.mrb[6].mxu1  ;;  %v1006_v62 = vsub.f32 %v1004_v49, %v1005_v52 }
 0x1ba   :  { %6039 = vmatpush3.bf16.msra.mxu1 %v7138_v46  ;;  %v5403_v6 = vpop.f32.mrb[7].mxu1 }
 0x1bb   :  { %5412 = vmatprep.mubr.f32.mxu0 %v397_v63  ;;  %v407_v7 = vand.u32 4294901760, %v406_v1  ;;  %6041 = vmatprep.subr.msk.bf16.mxu1 %vm7064_vm14, %v6785_v44  ;;  %v1012_v63 = vsub.f32 %v1010_v50, %v1011_v53  ;;  %v1007_v9 = vand.u32 4294901760, %v1006_v62 }
 0x1bd   :  { %5413 = vmatmul.mubr.f32.vlgmr.msra.gmra.mrb[0].mxu0 %v407_v7  ;;  %5435 = vmatmul.mubr.f32.vlgmr.msra.gmra.mrb[8].mxu1 %v404_v57  ;;  %v1013_v11 = vand.u32 4294901760, %v1012_v63 }
 0x1be   :  { %6043 = vmatpush3.bf16.msk.msra.mxu1 %vm7064_vm14, %v6785_v44  ;;  %5445 = vmatprep.mubr.f32.mxu1 %v395_v58 }
 0x1bf   :  { %6045 = vmatprep.subr.msk.bf16.mxu1 %vm7134_vm7, %v6785_v44  ;;  %5550 = vmatprep.mubr.msk.bf16.mxu0 %vm6784_vm0, %v6783_v0  ;;  %v7292_v16 = vpack.c.bf16 %v1013_v11, %v1007_v9 }
 0x1c2   :  { %6047 = vmatpush3.bf16.msk.msra.mxu1 %vm7134_vm7, %v6785_v44 }
 0x1c3   :  { %6049 = vmatprep.subr.bf16.mxu1 %v7171_v8 }
 0x1c5   :  { %5446 = vmatmul.mubr.f32.vlgmr.msra.gmra.mrb[8].mxu1 %v405_v59 }
 0x1c6   :  { %6051 = vmatpush3.bf16.msra.mxu1 %v7171_v8  ;;  %5456 = vmatprep.mubr.f32.mxu1 %v393_v51 }
 0x1c7   :  { %6053 = vmatprep.subr.bf16.mxu1 %v7147_v47 }
 0x1ca   :  { %6055 = vmatpush3.bf16.msra.mxu1 %v7147_v47 }
 0x1cb   :  { %6057 = vmatprep.subr.msk.bf16.mxu1 %vm7064_vm14, %v6785_v44 }
 0x1cd   :  { %5457 = vmatmul.mubr.f32.vlgmr.msra.gmra.mrb[8].mxu1 %v403_v56 }
 0x1ce   :  { %6059 = vmatpush3.bf16.msk.msra.mxu1 %vm7064_vm14, %v6785_v44  ;;  %5467 = vmatprep.mubr.f32.mxu1 %v393_v51 }
 0x1cf   :  { %6061 = vmatprep.subr.msk.bf16.mxu1 %vm7134_vm7, %v6785_v44 }
 0x1d2   :  { %6063 = vmatpush3.bf16.msk.msra.mxu1 %vm7134_vm7, %v6785_v44 }
 0x1d3   :  { %5470 = vmatprep.subr.bf16.mxu1 %v6783_v0 }
 0x1d5   :  { %5468 = vmatmul.mubr.f32.vlgmr.msra.gmra.mrb[8].mxu1 %v403_v56 }
 0x1d6   :  { %5471 = vmatpush3.bf16.msra.mxu1 %v7050_v10  ;;  %5472 = vmatprep.mubr.msk.bf16.mxu1 %vm6784_vm0, %v6783_v0  ;;  %v896_v10 = vsel %vm7205_vm6, 1.0, %v6783_v0  ;;  %vm2680_vm6 = vcmp.ge.s32.totalorder %v7033_v3, 2 }
 0x1d7   :  { %6065 = vmatprep.subr.msk.bf16.mxu1 %vm7224_vm13, %v6785_v44  ;;  %v992_v23 = vsub.f32 %v896_v10, %v896_v10  ;;  %vm2681_vm15 = vmand %vm2680_vm6, %vm259_vm2 }
 0x1d9   :  { %5473 = vmatmul.mubr.msk.bf16.vlgmr.msra.gmra.mrb[12].mxu1 %vm197_vm11, %v835_v18  ;;  %v993_v25 = vand.u32 4294901760, %v992_v23  ;;  %v7274_v35 = vpack.c.bf16 %v998_v24, %v992_v23  ;;  %v7298_v18 = vpack.c.bf16 %v1010_v50, %v1004_v49 }
 0x1da   :  { %6067 = vmatpush3.bf16.msk.msra.mxu1 %vm7224_vm13, %v6785_v44 }
 0x1db   :  { %6069 = vmatprep.subr.msk.bf16.mxu1 %vm7251_vm12, %v6785_v44  ;;  %v994_v30 = vsub.f32 %v992_v23, %v993_v25  ;;  %v7276_v36 = vpack.c.bf16 %v999_v26, %v993_v25 }
 0x1dd   :  { %v995_v32 = vand.u32 4294901760, %v994_v30 }
 0x1de   :  { %6071 = vmatpush3.bf16.msk.msra.mxu1 %vm7251_vm12, %v6785_v44 }
 0x1df   :  { %v7271_v34 = vpack.c.bf16 %v1001_v33, %v995_v32  ;;  %v6786_v33 = vmov 0  }
 0x1e0   :  { %6457 = vset.pattern.permute.xlu0 %v6786_v33  ;;  %6458 = vset.pattern.permute.xlu1 %v6786_v33 }
 0x1e1   :  { %6073 = vmatprep.subr.bf16.mxu1 %v7271_v34 }
 0x290   :  { %v5414_v37 = vpop.f32.mrb[0].mxu0 }
 0x291   :  { %v7279_v38 = vadd.f32 %v5414_v37, %v7155_v5  ;;  %v399_v39 = vpop.f32.mrb[1].mxu0 }
 0x292   :  { %v7282_v40 = vadd.f32 %v399_v39, %v7153_v61 }
 0x2ac   :  { %v873_v51 = vpop.f32.mrb[12].mxu1 }
 0x2ad   :  { %v901_v54 = vsel %vm321_vm8, %v873_v51, 0  ;;  %v5474_v55 = vpop.f32.mrb[13].mxu1 }
 0x2ae   :  { %v971_v56 = vand.u32 4294901760, %v901_v54  ;;  %v876_v57 = vpop.f32.mrb[14].mxu1 }
 0x2af   :  { %v904_v58 = vsel %vm321_vm8, %v876_v57, 0  ;;  %v5475_v59 = vpop.f32.mrb[15].mxu1  ;;  %v1434_v57 = vld [vmem:[#allocation10] sm:$0xff] }
 0x2b0   :  { %v972_v60 = vsub.f32 %v901_v54, %v971_v56  ;;  %v981_v61 = vand.u32 4294901760, %v904_v58 }
 0x2b2   :  { %v973_v1 = vand.u32 4294901760, %v972_v60  ;;  %v982_v5 = vsub.f32 %v904_v58, %v981_v61 }
 0x2b4   :  { %v983_v6 = vand.u32 4294901760, %v982_v5  ;;  %v974_v7 = vsub.f32 %v972_v60, %v973_v1 }
 0x2b6   :  { %v984_v12 = vsub.f32 %v982_v5, %v983_v6  ;;  %v975_v13 = vand.u32 4294901760, %v974_v7  ;;  %v1443_v7 = vld [vmem:[#allocation11 + $0x8] sm:$0xff] }
 0x2b8   :  { %v985_v14 = vand.u32 4294901760, %v984_v12  ;;  %5484 = vmatprep.mubr.f32.mxu1 %v975_v13 }
 0x2ba   :  { %5485 = vmatmul.mubr.f32.vlgmr.msra.gmra.mrb[8].mxu1 %v985_v14 }
 0x2bb   :  { %6075 = vmatpush3.bf16.msra.mxu1 %v7271_v34  ;;  %5495 = vmatprep.mubr.f32.mxu1 %v971_v56 }
 0x2bc   :  { %6077 = vmatprep.subr.bf16.mxu1 %v7292_v16 }
 0x2bf   :  { %6079 = vmatpush3.bf16.msra.mxu1 %v7292_v16 }
 0x2c0   :  { %6081 = vmatprep.subr.bf16.mxu1 %v7274_v35 }
 0x2c2   :  { %5496 = vmatmul.mubr.f32.vlgmr.msra.gmra.mrb[8].mxu1 %v981_v61 }
 0x2c3   :  { %6083 = vmatpush3.bf16.msra.mxu1 %v7274_v35  ;;  %5506 = vmatprep.mubr.f32.mxu1 %v972_v60  ;;  %v1435_v60 = vld [vmem:[#allocation10 + $0x8] sm:$0xff] }
 0x2c4   :  { %6085 = vmatprep.subr.bf16.mxu1 %v7298_v18 }
 0x2c7   :  { %6087 = vmatpush3.bf16.msra.mxu1 %v7298_v18 }
 0x2c8   :  { %6089 = vmatprep.subr.msk.bf16.mxu1 %vm7224_vm13, %v6785_v44 }
 0x2ca   :  { %5507 = vmatmul.mubr.f32.vlgmr.msra.gmra.mrb[8].mxu1 %v982_v5 }
 0x2cb   :  { %6091 = vmatpush3.bf16.msk.msra.mxu1 %vm7224_vm13, %v6785_v44  ;;  %5517 = vmatprep.mubr.f32.mxu1 %v973_v1  ;;  %v1442_v1 = vld [vmem:[#allocation11] sm:$0xff] }
 0x2cc   :  { %6093 = vmatprep.subr.msk.bf16.mxu1 %vm7251_vm12, %v6785_v44 }
 0x2cf   :  { %6095 = vmatpush3.bf16.msk.msra.mxu1 %vm7251_vm12, %v6785_v44 }
 0x2d0   :  { %6097 = vmatprep.subr.bf16.mxu1 %v7276_v36 }
 0x2d2   :  { %5518 = vmatmul.mubr.f32.vlgmr.msra.gmra.mrb[8].mxu1 %v983_v6 }
 0x2d3   :  { %6099 = vmatpush3.bf16.msra.mxu1 %v7276_v36  ;;  %5528 = vmatprep.mubr.f32.mxu1 %v971_v56 }
 0x2d4   :  { %6101 = vmatprep.subr.bf16.mxu1 %v7316_v19 }
 0x2d7   :  { %6103 = vmatpush3.bf16.msra.mxu1 %v7316_v19 }
 0x2d8   :  { %6105 = vmatprep.subr.msk.bf16.mxu1 %vm7224_vm13, %v6785_v44 }
 0x2da   :  { %5529 = vmatmul.mubr.f32.vlgmr.msra.gmra.mrb[8].mxu1 %v981_v61 }
 0x2db   :  { %6107 = vmatpush3.bf16.msk.msra.mxu1 %vm7224_vm13, %v6785_v44  ;;  %5539 = vmatprep.mubr.f32.mxu1 %v971_v56 }
 0x2dc   :  { %6109 = vmatprep.subr.msk.bf16.mxu1 %vm7251_vm12, %v6785_v44 }
 0x2df   :  { %6111 = vmatpush3.bf16.msk.msra.mxu1 %vm7251_vm12, %v6785_v44 }
 0x2e0   :  { %5542 = vmatprep.subr.bf16.mxu1 %v6783_v0 }
 0x2e2   :  { %5540 = vmatmul.mubr.f32.vlgmr.msra.gmra.mrb[8].mxu1 %v981_v61 }
 0x2e3   :  { %5544 = vmatprep.mubr.msk.bf16.mxu1 %vm6784_vm0, %v6783_v0 }
 0x3b5   :  { %v5541_v20 = vpop.f32.mrb[8].mxu1 }
 0x3b6   :  { %v6328_v10 = vadd.f32 %v5541_v20, %v7279_v38  ;;  %v1400_v22 = vpop.f32.mrb[9].mxu1 }
 0x3b7   :  { %v6329_v23 = vadd.f32 %v1400_v22, %v7282_v40 }
 0x3b8   :  { %v1419_v30 = vmul.f32 %v6328_v10, %v6328_v10  ;;  %v1415_v31 = vsel %vm321_vm8, %v6328_v10, 0.0 }
 0x3b9   :  { %v1412_v24 = vsel %vm321_vm8, %v6329_v23, 0.0  ;;  %v1418_v25 = vmul.f32 %v6329_v23, %v6329_v23 }
 0x3ba   :  { %1413 = vadd.xlane.f32.xlu0 %v1412_v24  ;;  %v1423_v32 = vsel %vm321_vm8, %v1419_v30, 0.0 }
 0x3bb   :  { %v1420_v26 = vsel %vm321_vm8, %v1418_v25, 0.0 }
 0x3bc   :  { %1421 = vadd.xlane.f32.xlu1 %v1420_v26 }
 0x3be   :  { %1416 = vadd.xlane.f32.xlu0 %v1415_v31  ;;  %v1475_v31 = vld [vmem:[#allocation13] sm:$0xff] }
 0x3c0   :  { %1424 = vadd.xlane.f32.xlu1 %v1423_v32  ;;  %v1522_v32 = vld [vmem:[#allocation13 + $0x8] sm:$0xff] }
 0x447   :  { %v1414_v37 = vpop.xlane.xlu0 %1413 }
 0x448   :  { %v1426_v38 = vmul.f32 0.03125, %v1414_v37  ;;  %v1476_v37 = vpack.c.bf16 %v1475_v31, %v1475_v31 }
 0x449   :  { %v1422_v39 = vpop.xlane.xlu1 %1421 }
 0x44a   :  { %v1430_v40 = vmul.f32 %v1426_v38, %v1426_v38  ;;  %v1428_v41 = vmul.f32 0.03125, %v1422_v39  ;;  %v6787_v39 = vmov 0.0|0.0  }
 0x44b   :  { %v1417_v48 = vpop.xlane.xlu0 %1416 }
 0x44c   :  { %v1432_v49 = vsub.f32 %v1428_v41, %v1430_v40  ;;  %v1427_v50 = vmul.f32 0.03125, %v1417_v48 }
 0x44d   :  { %v1425_v51 = vpop.xlane.xlu1 %1424 }
 0x44e   :  { %v1436_v52 = vadd.f32 1e-05, %v1432_v49  ;;  %v1431_v53 = vmul.f32 %v1427_v50, %v1427_v50  ;;  %v1429_v54 = vmul.f32 0.03125, %v1425_v51 }
 0x450   :  { %6459 = vrsqrt.f32 %v1436_v52  ;;  %v1433_v55 = vsub.f32 %v1429_v54, %v1431_v53 }
 0x452   :  { %v1437_v56 = vadd.f32 1e-05, %v1433_v55  ;;  %v2574_v55 = vld [vmem:[#allocation5] sm:$0xf] }
 0x454   :  { %6461 = vrsqrt.f32 %v1437_v56 }
 0x45a   :  { %v6460_v58 = vpop.eup %6459 }
 0x45b   :  { %v1440_v59 = vmul.f32 %v6460_v58, %v1434_v57  ;;  %v2575_v58 = vpack.c.bf16 %v2574_v55, %v2574_v55 }
 0x45d   :  { %1450 = vperm.xlu0 %6457, %v1440_v59   ;;  %v1444_v63 = vmul.f32 %v1440_v59, %v1426_v38  ;;  %v1523_v38 = vpack.c.bf16 %v1522_v32, %v1522_v32 }
 0x45e   :  { %v6462_v61 = vpop.eup %6461 }
 0x45f   :  { %v1441_v62 = vmul.f32 %v6462_v61, %v1435_v60  ;;  %v1446_v5 = vsub.f32 %v1442_v1, %v1444_v63  ;;  %v7374_v60 = vsel %vm201_vm5, %v2575_v58, 0  ;;  %v2032_v61 = vld [vmem:[#allocation13 + $0x10] sm:$0xff]  ;;  %vm2631_vm5 = vcmask 1043456  }
 0x461   :  { %1455 = vperm.xlu1 %6458, %v1441_v62   ;;  %v1445_v6 = vmul.f32 %v1441_v62, %v1427_v50  ;;  %v2033_v62 = vpack.c.bf16 %v2032_v61, %v2032_v61 }
 0x463   :  { %v1447_v9 = vsub.f32 %v1443_v7, %v1445_v6 }
 0x465   :  { %1462 = vperm.xlu1 %6458, %v1446_v5  }
 0x469   :  { %1467 = vperm.xlu1 %6458, %v1447_v9  }
 0x4dc   :  { %v1451_v12 = vpop.permute.xlu0 %1450 }
 0x4dd   :  { %v1458_v14 = vmul.f32 %v6329_v23, %v1451_v12 }
 0x4e0   :  { %v1456_v11 = vpop.permute.xlu1 %1455 }
 0x4e1   :  { %v1459_v20 = vmul.f32 %v6328_v10, %v1456_v11 }
 0x4e4   :  { %v1463_v13 = vpop.permute.xlu1 %1462 }
 0x4e5   :  { %v1470_v22 = vadd.f32 %v1463_v13, %v1458_v14 }
 0x4e7   :  { %v1472_v26 = vmax.f32 %v1470_v22, 0.0 }
 0x4e8   :  { %v1468_v24 = vpop.permute.xlu1 %1467 }
 0x4e9   :  { %v1471_v25 = vadd.f32 %v1468_v24, %v1459_v20 }
 0x4eb   :  { %v1473_v30 = vmax.f32 %v1471_v25, 0.0 }
 0x4ed   :  { %v7342_v33 = vpack.c.bf16 %v1473_v30, %v1472_v26 }
 0x4ef   :  { %5543 = vmatpush3.bf16.msra.mxu1 %v7342_v33  ;;  %5549 = vmatpush3.bf16.msra.mxu0 %v7342_v33 }
 0x4f0   :  { %6118 = vmatprep.subr.bf16.mxu0 %v6787_v39  ;;  %6112 = vmatprep.subr.bf16.mxu1 %v6787_v39 }
 0x4f2   :  { %5545 = vmatmul.mubr.msk.bf16.vlgmr.msra.gmra.mrb[16].mxu1 %vm1477_vm9, %v1476_v37  ;;  %5551 = vmatmul.mubr.msk.bf16.vlgmr.msra.gmra.mrb[4].mxu0 %vm1477_vm9, %v1523_v38 }
 0x4f3   :  { %6120 = vmatpush3.bf16.msra.mxu0 %v7085_v27  ;;  %5573 = vmatprep.mubr.msk.f32.mxu0 %vm6784_vm0, %v6783_v0 }
 0x4f4   :  { %6121 = vmatprep.subr.bf16.mxu0 %v6787_v39  ;;  %6114 = vmatpush3.bf16.msk.msra.mxu1 %vm7064_vm14, %v6785_v44 }
 0x4f5   :  { %6115 = vmatprep.subr.bf16.mxu1 %v6787_v39  ;;  %5562 = vmatprep.mubr.msk.f32.mxu1 %vm6784_vm0, %v6783_v0 }
 0x4f7   :  { %6123 = vmatpush3.bf16.msra.mxu0 %v7115_v42 }
 0x4f8   :  { %6124 = vmatprep.subr.bf16.mxu0 %v6787_v39  ;;  %6117 = vmatpush3.bf16.msk.msra.mxu1 %vm7134_vm7, %v6785_v44 }
 0x4f9   :  { %5692 = vmatprep.subr.bf16.mxu1 %v6783_v0 }
 0x5c5   :  { %v1515_v10 = vpop.f32.mrb[16].mxu1  ;;  %v1561_v23 = vpop.f32.mrb[4].mxu0 }
 0x5c6   :  { %v1568_v40 = vsel %vm321_vm8, %v1515_v10, 0  ;;  %v5546_v41 = vpop.f32.mrb[17].mxu1  ;;  %v5552_v48 = vpop.f32.mrb[5].mxu0 }
 0x5c7   :  { %v1635_v49 = vand.u32 4294901760, %v1568_v40  ;;  %v1518_v50 = vpop.f32.mrb[18].mxu1  ;;  %v1564_v51 = vpop.f32.mrb[6].mxu0 }
 0x5c8   :  { %v5547_v52 = vpop.f32.mrb[19].mxu1  ;;  %v5553_v53 = vpop.f32.mrb[7].mxu0  ;;  %v3714_v51 = vld [vmem:[#allocation17 + $0x10] sm:$0xff] }
 0x5c9   :  { %v1636_v54 = vsub.f32 %v1568_v40, %v1635_v49  ;;  %5574 = vmatmul.mubr.f32.vlgmr.msra.gmra.mrb[2].mxu0 %v1635_v49  ;;  %v2557_v53 = vld [vmem:[#allocation16] sm:$0xff]  ;;  %v3715_v55 = vpack.c.bf16 %v3714_v51, %v3714_v51 }
 0x5ca   :  { %6126 = vmatpush3.bf16.msra.mxu0 %v7121_v43  ;;  %5584 = vmatprep.mubr.msk.f32.mxu0 %vm6784_vm0, %v6783_v0 }
 0x5cb   :  { %v1637_v56 = vand.u32 4294901760, %v1636_v54  ;;  %6127 = vmatprep.subr.bf16.mxu0 %v6787_v39 }
 0x5cd   :  { %v1638_v57 = vsub.f32 %v1636_v54, %v1637_v56 }
 0x5ce   :  { %6129 = vmatpush3.bf16.msra.mxu0 %v7138_v46 }
 0x5cf   :  { %v1639_v59 = vand.u32 4294901760, %v1638_v57  ;;  %6130 = vmatprep.subr.bf16.mxu0 %v6787_v39 }
 0x5d1   :  { %5563 = vmatmul.mubr.f32.vlgmr.msra.gmra.mrb[10].mxu1 %v1639_v59  ;;  %5585 = vmatmul.mubr.f32.vlgmr.msra.gmra.mrb[2].mxu0 %v1636_v54  ;;  %v2576_v59 = vld [vmem:[#allocation17] sm:$0xff] }
 0x5d2   :  { %6132 = vmatpush3.bf16.msk.msra.mxu0 %vm7064_vm14, %v6785_v44  ;;  %5595 = vmatprep.mubr.msk.f32.mxu0 %vm6784_vm0, %v6783_v0  ;;  %v2577_v61 = vpack.c.bf16 %v2576_v59, %v2576_v59 }
 0x5d3   :  { %6133 = vmatprep.subr.bf16.mxu0 %v6787_v39  ;;  %5693 = vmatpush3.bf16.msra.mxu1 %v7374_v60 }
 0x5d4   :  { %5694 = vmatprep.mubr.msk.bf16.mxu1 %vm6784_vm0, %v6783_v0  ;;  %5698 = vmatprep.subr.bf16.mxu1 %v6783_v0 }
 0x5d6   :  { %6135 = vmatpush3.bf16.msk.msra.mxu0 %vm7134_vm7, %v6785_v44 }
 0x5d7   :  { %6136 = vmatprep.subr.bf16.mxu0 %v6787_v39 }
 0x5d9   :  { %5596 = vmatmul.mubr.f32.vlgmr.msra.gmra.mrb[2].mxu0 %v1637_v56  ;;  %v3807_v56 = vld [vmem:[#allocation17 + $0x18] sm:$0xff] }
 0x5da   :  { %6138 = vmatpush3.bf16.msra.mxu0 %v7171_v8  ;;  %5606 = vmatprep.mubr.msk.f32.mxu0 %vm6784_vm0, %v6783_v0  ;;  %v3808_v58 = vpack.c.bf16 %v3807_v56, %v3807_v56 }
 0x5db   :  { %6139 = vmatprep.subr.bf16.mxu0 %v6787_v39 }
 0x5de   :  { %6141 = vmatpush3.bf16.msra.mxu0 %v7147_v47 }
 0x5df   :  { %6142 = vmatprep.subr.bf16.mxu0 %v6787_v39 }
 0x5e1   :  { %5607 = vmatmul.mubr.f32.vlgmr.msra.gmra.mrb[2].mxu0 %v1635_v49 }
 0x5e2   :  { %6144 = vmatpush3.bf16.msk.msra.mxu0 %vm7064_vm14, %v6785_v44  ;;  %5617 = vmatprep.mubr.msk.f32.mxu0 %vm6784_vm0, %v6783_v0 }
 0x5e3   :  { %6145 = vmatprep.subr.bf16.mxu0 %v6787_v39 }
 0x5e6   :  { %6147 = vmatpush3.bf16.msk.msra.mxu0 %vm7134_vm7, %v6785_v44 }
 0x5e7   :  { %5620 = vmatprep.subr.bf16.mxu0 %v6783_v0 }
 0x5e9   :  { %5618 = vmatmul.mubr.f32.vlgmr.msra.gmra.mrb[2].mxu0 %v1635_v49  ;;  %v2553_v49 = vld [vmem:[#allocation14] sm:$0xff] }
 0x5ea   :  { %5621 = vmatpush3.bf16.msra.mxu0 %v7342_v33  ;;  %5622 = vmatprep.mubr.msk.bf16.mxu0 %vm6784_vm0, %v6783_v0 }
 0x5eb   :  { %6148 = vmatprep.subr.bf16.mxu0 %v6787_v39 }
 0x5ed   :  { %5623 = vmatmul.mubr.msk.bf16.vlgmr.msra.gmra.mrb[8].mxu0 %vm1477_vm9, %v2033_v62  ;;  %v2694_v62 = vld [vmem:[#allocation17 + $0x8] sm:$0xff]  ;;  %vm7589_vm9 = vmor %vm2681_vm15, %vm2683_vm3 }
 0x5ee   :  { %6150 = vmatpush3.bf16.msk.msra.mxu0 %vm7224_vm13, %v6785_v44  ;;  %5634 = vmatprep.mubr.msk.f32.mxu0 %vm6784_vm0, %v6783_v0 }
 0x5ef   :  { %6151 = vmatprep.subr.bf16.mxu0 %v6787_v39 }
 0x5f2   :  { %6153 = vmatpush3.bf16.msk.msra.mxu0 %vm7251_vm12, %v6785_v44 }
 0x5f3   :  { %6154 = vmatprep.subr.bf16.mxu0 %v6787_v39 }
 0x6a4   :  { %v1641_v63 = vpop.f32.mrb[10].mxu1 }
 0x6a5   :  { %v1642_v1 = vadd.f32 %v1641_v63, %v1561_v23  ;;  %v5564_v5 = vpop.f32.mrb[11].mxu1  ;;  %v2695_v63 = vpack.c.bf16 %v2694_v62, %v2694_v62 }
 0x6c0   :  { %v2071_v6 = vpop.f32.mrb[8].mxu0 }
 0x6c1   :  { %v2078_v7 = vsel %vm321_vm8, %v2071_v6, 0  ;;  %v5624_v9 = vpop.f32.mrb[9].mxu0 }
 0x6c2   :  { %v2145_v11 = vand.u32 4294901760, %v2078_v7  ;;  %v2074_v12 = vpop.f32.mrb[10].mxu0 }
 0x6c3   :  { %v5625_v13 = vpop.f32.mrb[11].mxu0 }
 0x6c4   :  { %v2146_v14 = vsub.f32 %v2078_v7, %v2145_v11 }
 0x6c6   :  { %v2147_v20 = vand.u32 4294901760, %v2146_v14 }
 0x6c8   :  { %v2148_v22 = vsub.f32 %v2146_v14, %v2147_v20 }
 0x6ca   :  { %v2149_v24 = vand.u32 4294901760, %v2148_v22 }
 0x6cc   :  { %5635 = vmatmul.mubr.f32.vlgmr.msra.gmra.mrb[2].mxu0 %v2149_v24 }
 0x6cd   :  { %6156 = vmatpush3.bf16.msra.mxu0 %v7271_v34  ;;  %5645 = vmatprep.mubr.msk.f32.mxu0 %vm6784_vm0, %v6783_v0 }
 0x6ce   :  { %6157 = vmatprep.subr.bf16.mxu0 %v6787_v39 }
 0x6d1   :  { %6159 = vmatpush3.bf16.msra.mxu0 %v7292_v16 }
 0x6d2   :  { %6160 = vmatprep.subr.bf16.mxu0 %v6787_v39 }
 0x6d4   :  { %5646 = vmatmul.mubr.f32.vlgmr.msra.gmra.mrb[2].mxu0 %v2145_v11 }
 0x6d5   :  { %6162 = vmatpush3.bf16.msra.mxu0 %v7274_v35  ;;  %5656 = vmatprep.mubr.msk.f32.mxu0 %vm6784_vm0, %v6783_v0 }
 0x6d6   :  { %6163 = vmatprep.subr.bf16.mxu0 %v6787_v39 }
 0x6d9   :  { %6165 = vmatpush3.bf16.msra.mxu0 %v7298_v18 }
 0x6da   :  { %6166 = vmatprep.subr.bf16.mxu0 %v6787_v39 }
 0x6dc   :  { %5657 = vmatmul.mubr.f32.vlgmr.msra.gmra.mrb[2].mxu0 %v2146_v14 }
 0x6dd   :  { %6168 = vmatpush3.bf16.msk.msra.mxu0 %vm7224_vm13, %v6785_v44  ;;  %5667 = vmatprep.mubr.msk.f32.mxu0 %vm6784_vm0, %v6783_v0 }
 0x6de   :  { %6169 = vmatprep.subr.bf16.mxu0 %v6787_v39 }
 0x6e1   :  { %6171 = vmatpush3.bf16.msk.msra.mxu0 %vm7251_vm12, %v6785_v44 }
 0x6e2   :  { %6172 = vmatprep.subr.bf16.mxu0 %v6787_v39 }
 0x6e4   :  { %5668 = vmatmul.mubr.f32.vlgmr.msra.gmra.mrb[2].mxu0 %v2147_v20 }
 0x6e5   :  { %6174 = vmatpush3.bf16.msra.mxu0 %v7276_v36  ;;  %5678 = vmatprep.mubr.msk.f32.mxu0 %vm6784_vm0, %v6783_v0 }
 0x6e6   :  { %6175 = vmatprep.subr.bf16.mxu0 %v6787_v39 }
 0x6e9   :  { %6177 = vmatpush3.bf16.msra.mxu0 %v7316_v19 }
 0x6ea   :  { %6178 = vmatprep.subr.bf16.mxu0 %v6787_v39 }
 0x6ec   :  { %5679 = vmatmul.mubr.f32.vlgmr.msra.gmra.mrb[2].mxu0 %v2145_v11 }
 0x6ed   :  { %6180 = vmatpush3.bf16.msk.msra.mxu0 %vm7224_vm13, %v6785_v44  ;;  %5689 = vmatprep.mubr.msk.f32.mxu0 %vm6784_vm0, %v6783_v0 }
 0x6ee   :  { %6181 = vmatprep.subr.bf16.mxu0 %v6787_v39 }
 0x6f1   :  { %6183 = vmatpush3.bf16.msk.msra.mxu0 %vm7251_vm12, %v6785_v44 }
 0x6f2   :  { %5848 = vmatprep.subr.bf16.mxu0 %v6783_v0 }
 0x6f4   :  { %5690 = vmatmul.mubr.f32.vlgmr.msra.gmra.mrb[2].mxu0 %v2145_v11 }
 0x6f5   :  { %5849 = vmatpush3.bf16.msra.mxu0 %v7374_v60  ;;  %5850 = vmatprep.mubr.msk.bf16.mxu0 %vm6784_vm0, %v6783_v0 }
 0x6f6   :  { %5854 = vmatprep.subr.bf16.mxu0 %v6783_v0 }
 0x7c7   :  { %v2537_v25 = vpop.f32.mrb[2].mxu0 }
 0x7c8   :  { %v6330_v26 = vadd.f32 %v2537_v25, %v1642_v1  ;;  %v5691_v30 = vpop.f32.mrb[3].mxu0  ;;  %v4364_v1 = vld [vmem:[#allocation17 + $0x20] sm:$0xff] }
 0x7c9   :  { %v7466_v5 = vpack.c.bf16 %v4364_v1, %v4364_v1 }
 0x7ca   :  { %v2542_v31 = vsel %vm321_vm8, %v6330_v26, 0.0  ;;  %v2545_v32 = vmul.f32 %v6330_v26, %v6330_v26 }
 0x7cb   :  { %2543 = vadd.xlane.f32.xlu1 %v2542_v31 }
 0x7cc   :  { %v2546_v33 = vsel %vm321_vm8, %v2545_v32, 0.0 }
 0x7cd   :  { %2547 = vadd.xlane.f32.xlu0 %v2546_v33 }
 0x858   :  { %v2544_v37 = vpop.xlane.xlu1 %2543 }
 0x859   :  { %v2549_v38 = vmul.f32 0.03125, %v2544_v37 }
 0x85a   :  { %v2548_v10 = vpop.xlane.xlu0 %2547 }
 0x85b   :  { %v2551_v23 = vmul.f32 %v2549_v38, %v2549_v38  ;;  %v2550_v40 = vmul.f32 0.03125, %v2548_v10 }
 0x85d   :  { %v2552_v41 = vsub.f32 %v2550_v40, %v2551_v23 }
 0x85f   :  { %v2554_v48 = vadd.f32 1e-05, %v2552_v41 }
 0x861   :  { %6463 = vrsqrt.f32 %v2554_v48 }
 0x86b   :  { %v6464_v50 = vpop.eup %6463 }
 0x86c   :  { %v2556_v52 = vmul.f32 %v6464_v50, %v2553_v49 }
 0x86e   :  { %2562 = vperm.xlu1 %6458, %v2556_v52   ;;  %v2558_v54 = vmul.f32 %v2556_v52, %v2549_v38 }
 0x870   :  { %v2559_v57 = vsub.f32 %v2557_v53, %v2558_v54 }
 0x872   :  { %2568 = vperm.xlu0 %6457, %v2559_v57   ;;  %3717 = vrot.lane.b32.xlu1 %v3715_v55, %s6788_s11 }
 0x876   :  { %3810 = vrot.lane.b32.xlu1 %v3808_v58, %s6788_s11 }
 0x87a   :  { %2579 = vrot.lane.b32.xlu1 %v2577_v61, %s6788_s11 }
 0x87e   :  { %2697 = vrot.lane.b32.xlu1 %v2695_v63, %s6788_s11 }
 0x882   :  { %4367 = vrot.lane.b32.xlu1 %v7466_v5, %s6788_s11 }
 0x8ed   :  { %v2563_v6 = vpop.permute.xlu1 %2562 }
 0x8ee   :  { %v2565_v7 = vmul.f32 %v6330_v26, %v2563_v6 }
 0x8f1   :  { %v3718_v9 = vpop.permute.xlu1 %3717  ;;  %v2569_v11 = vpop.permute.xlu0 %2568 }
 0x8f2   :  { %v2571_v12 = vadd.f32 %v2569_v11, %v2565_v7  ;;  %5851 = vmatmul.mubr.msk.bf16.vlgmr.msra.gmra.mrb[12].mxu0 %vm197_vm11, %v3718_v9 }
 0x8f3   :  { %5856 = vmatprep.mubr.msk.bf16.mxu0 %vm6784_vm0, %v6783_v0 }
 0x8f4   :  { %v2572_v13 = vmax.f32 %v2571_v12, 0.0 }
 0x8f5   :  { %v3811_v14 = vpop.permute.xlu1 %3810 }
 0x8f6   :  { %v2573_v20 = vpack.c.bf16 %v2572_v13, %v2572_v13 }
 0x8f8   :  { %v7472_v22 = vsel %vm2631_vm5, %v2573_v20, 0 }
 0x8f9   :  { %v2580_v24 = vpop.permute.xlu1 %2579  ;;  %5855 = vmatpush3.bf16.msra.mxu0 %v7472_v22 }
 0x8fa   :  { %5695 = vmatmul.mubr.msk.bf16.vlgmr.msra.gmra.mrb[20].mxu1 %vm197_vm11, %v2580_v24  ;;  %5860 = vmatprep.subr.bf16.mxu0 %v6783_v0 }
 0x8fb   :  { %5699 = vmatpush3.bf16.msra.mxu1 %v7472_v22  ;;  %5700 = vmatprep.mubr.msk.bf16.mxu1 %vm6784_vm0, %v6783_v0 }
 0x8fc   :  { %5704 = vmatprep.subr.bf16.mxu1 %v6783_v0 }
 0x8fd   :  { %v2698_v25 = vpop.permute.xlu1 %2697 }
 0x8fe   :  { %5857 = vmatmul.mubr.msk.bf16.vlgmr.msra.gmra.mrb[12].mxu0 %vm2627_vm1, %v3715_v55 }
 0x8ff   :  { %5861 = vmatpush3.bf16.msra.mxu0 %v7374_v60  ;;  %5862 = vmatprep.mubr.msk.bf16.mxu0 %vm6784_vm0, %v6783_v0 }
 0x900   :  { %5866 = vmatprep.subr.bf16.mxu0 %v6783_v0 }
 0x906   :  { %5701 = vmatmul.mubr.msk.bf16.vlgmr.msra.gmra.mrb[20].mxu1 %vm2627_vm1, %v2577_v61  ;;  %5863 = vmatmul.mubr.msk.bf16.vlgmr.msra.gmra.mrb[16].mxu0 %vm197_vm11, %v3811_v14 }
 0x907   :  { %5867 = vmatpush3.bf16.msra.mxu0 %v7472_v22  ;;  %5705 = vmatpush3.bf16.msra.mxu1 %v7374_v60 }
 0x908   :  { %5706 = vmatprep.mubr.msk.bf16.mxu1 %vm6784_vm0, %v6783_v0  ;;  %5710 = vmatprep.subr.bf16.mxu1 %v6783_v0 }
 0x909   :  { %5868 = vmatprep.mubr.msk.bf16.mxu0 %vm6784_vm0, %v6783_v0  ;;  %6256 = vmatprep.subr.bf16.mxu0 %v6787_v39 }
 0x90e   :  { %5707 = vmatmul.mubr.msk.bf16.vlgmr.msra.gmra.mrb[24].mxu1 %vm197_vm11, %v2698_v25 }
 0x90f   :  { %5711 = vmatpush3.bf16.msra.mxu1 %v7472_v22  ;;  %5712 = vmatprep.mubr.msk.bf16.mxu1 %vm6784_vm0, %v6783_v0 }
 0x910   :  { %6184 = vmatprep.subr.bf16.mxu1 %v6787_v39 }
 0x912   :  { %5869 = vmatmul.mubr.msk.bf16.vlgmr.msra.gmra.mrb[16].mxu0 %vm2627_vm1, %v3808_v58 }
 0x913   :  { %6258 = vmatpush3.bf16.msk.msra.mxu0 %vm7224_vm13, %v6785_v44  ;;  %5880 = vmatprep.mubr.msk.f32.mxu0 %vm6784_vm0, %v6783_v0 }
 0x914   :  { %6259 = vmatprep.subr.bf16.mxu0 %v6787_v39 }
 0x917   :  { %6261 = vmatpush3.bf16.msk.msra.mxu0 %vm7251_vm12, %v6785_v44 }
 0x918   :  { %6262 = vmatprep.subr.bf16.mxu0 %v6787_v39 }
 0x91a   :  { %5713 = vmatmul.mubr.msk.bf16.vlgmr.msra.gmra.mrb[24].mxu1 %vm2627_vm1, %v2695_v63 }
 0x91b   :  { %6186 = vmatpush3.bf16.msk.msra.mxu1 %vm7064_vm14, %v6785_v44  ;;  %5724 = vmatprep.mubr.msk.f32.mxu1 %vm6784_vm0, %v6783_v0 }
 0x91c   :  { %6187 = vmatprep.subr.bf16.mxu1 %v6787_v39 }
 0x91f   :  { %6189 = vmatpush3.bf16.msk.msra.mxu1 %vm7134_vm7, %v6785_v44 }
 0x920   :  { %6190 = vmatprep.subr.bf16.mxu1 %v6787_v39 }
 0x9d1   :  { %v7523_v26 = vpop.f32.mrb[12].mxu0 }
 0x9d2   :  { %v5858_v30 = vpop.f32.mrb[13].mxu0 }
 0x9d3   :  { %v3802_v31 = vpop.f32.mrb[14].mxu0 }
 0x9d4   :  { %v5859_v32 = vpop.f32.mrb[15].mxu0 }
 0x9d9   :  { %v7525_v33 = vpop.f32.mrb[20].mxu1 }
 0x9da   :  { %v5702_v37 = vpop.f32.mrb[21].mxu1 }
 0x9db   :  { %v2672_v38 = vpop.f32.mrb[22].mxu1 }
 0x9dc   :  { %v5703_v10 = vpop.f32.mrb[23].mxu1 }
 0x9e5   :  { %v3892_v23 = vpop.f32.mrb[16].mxu0 }
 0x9e6   :  { %v3899_v40 = vsel %vm321_vm8, %v3892_v23, 0  ;;  %v5870_v41 = vpop.f32.mrb[17].mxu0 }
 0x9e7   :  { %v7528_v48 = vand.u32 4294901760, %v3899_v40  ;;  %v3895_v49 = vpop.f32.mrb[18].mxu0 }
 0x9e8   :  { %v5871_v50 = vpop.f32.mrb[19].mxu0 }
 0x9e9   :  { %v3967_v51 = vsub.f32 %v3899_v40, %v7528_v48 }
 0x9eb   :  { %v3968_v52 = vand.u32 4294901760, %v3967_v51 }
 0x9ed   :  { %v3969_v53 = vsub.f32 %v3967_v51, %v3968_v52  ;;  %v2779_v54 = vpop.f32.mrb[24].mxu1 }
 0x9ee   :  { %v2786_v55 = vsel %vm321_vm8, %v2779_v54, 0  ;;  %v5714_v56 = vpop.f32.mrb[25].mxu1 }
 0x9ef   :  { %v3970_v57 = vand.u32 4294901760, %v3969_v53  ;;  %v7532_v58 = vand.u32 4294901760, %v2786_v55  ;;  %v2782_v59 = vpop.f32.mrb[26].mxu1 }
 0x9f0   :  { %v5715_v61 = vpop.f32.mrb[27].mxu1 }
 0x9f1   :  { %v2854_v62 = vsub.f32 %v2786_v55, %v7532_v58  ;;  %5881 = vmatmul.mubr.f32.vlgmr.msra.gmra.mrb[20].mxu0 %v3970_v57 }
 0x9f2   :  { %6264 = vmatpush3.bf16.msra.mxu0 %v7271_v34  ;;  %5891 = vmatprep.mubr.msk.f32.mxu0 %vm6784_vm0, %v6783_v0  ;;  %v3250_v34 = vsel %vm321_vm8, %v7525_v33, 0 }
 0x9f3   :  { %v2855_v63 = vand.u32 4294901760, %v2854_v62  ;;  %6265 = vmatprep.subr.bf16.mxu0 %v6787_v39  ;;  %v7645_v17 = vand.u32 4294901760, %v3250_v34 }
 0x9f5   :  { %v2856_v1 = vsub.f32 %v2854_v62, %v2855_v63  ;;  %v7664_v21 = vsub.f32 %v3250_v34, %v7645_v17 }
 0x9f6   :  { %6267 = vmatpush3.bf16.msra.mxu0 %v7292_v16 }
 0x9f7   :  { %v2857_v6 = vand.u32 4294901760, %v2856_v1  ;;  %6268 = vmatprep.subr.bf16.mxu0 %v6787_v39  ;;  %v3319_v15 = vand.u32 4294901760, %v7664_v21 }
 0x9f9   :  { %5725 = vmatmul.mubr.f32.vlgmr.msra.gmra.mrb[28].mxu1 %v2857_v6  ;;  %5892 = vmatmul.mubr.f32.vlgmr.msra.gmra.mrb[20].mxu0 %v7528_v48  ;;  %v3320_v45 = vsub.f32 %v7664_v21, %v3319_v15 }
 0x9fa   :  { %6270 = vmatpush3.bf16.msra.mxu0 %v7274_v35  ;;  %6192 = vmatpush3.bf16.msra.mxu1 %v7085_v27  ;;  %v2675_v27 = vadd.s32 4294967294, %v7033_v3 }
 0x9fb   :  { %6271 = vmatprep.subr.bf16.mxu0 %v6787_v39  ;;  %6193 = vmatprep.subr.bf16.mxu1 %v6787_v39  ;;  %v3321_v38 = vand.u32 4294901760, %v3320_v45 }
 0x9fc   :  { %5735 = vmatprep.mubr.msk.f32.mxu1 %vm6784_vm0, %v6783_v0  ;;  %5902 = vmatprep.mubr.msk.f32.mxu0 %vm6784_vm0, %v6783_v0  ;;  %vm2676_vm2 = vcmp.eq.s32.totalorder %v7031_v2, %v2675_v27  ;;  %vm2677_vm4 = vcmp.eq.s32.totalorder %v7036_v4, %v2675_v27  ;;  %vm2678_vm10 = vcmp.eq.s32.totalorder %v7090_v28, %v2675_v27 }
 0x9fd   :  { %vm7602_vm5 = vmand %vm2676_vm2, %vm7589_vm9  ;;  %vm2679_vm15 = vcmp.eq.s32.totalorder %v7093_v29, %v2675_v27 }
 0x9fe   :  { %6273 = vmatpush3.bf16.msra.mxu0 %v7298_v18  ;;  %6195 = vmatpush3.bf16.msra.mxu1 %v7115_v42  ;;  %vm7608_vm6 = vmand %vm2677_vm4, %vm7589_vm9  ;;  %v2689_v35 = vsel %vm7602_vm5, 1.0, %v6783_v0 }
 0x9ff   :  { %6274 = vmatprep.subr.bf16.mxu0 %v6787_v39  ;;  %6196 = vmatprep.subr.bf16.mxu1 %v6787_v39  ;;  %vm7631_vm3 = vmand %vm2678_vm10, %vm7589_vm9  ;;  %v7651_v18 = vsub.f32 %v2689_v35, %v2689_v35 }
 0xa00   :  { %v2691_v7 = vsel %vm7631_vm3, 1.0, %v6783_v0 }
 0xa01   :  { %5736 = vmatmul.mubr.f32.vlgmr.msra.gmra.mrb[28].mxu1 %v7532_v58  ;;  %5903 = vmatmul.mubr.f32.vlgmr.msra.gmra.mrb[20].mxu0 %v3967_v51  ;;  %v7672_v11 = vsub.f32 %v2691_v7, %v2691_v7  ;;  %v3329_v13 = vand.u32 4294901760, %v7651_v18  ;;  %v4455_v51 = vadd.s32 2, %v7033_v3 }
 0xa02   :  { %6276 = vmatpush3.bf16.msk.msra.mxu0 %vm7224_vm13, %v6785_v44  ;;  %6198 = vmatpush3.bf16.msra.mxu1 %v7121_v43 }
 0xa03   :  { %6277 = vmatprep.subr.bf16.mxu0 %v6787_v39  ;;  %6199 = vmatprep.subr.bf16.mxu1 %v6787_v39  ;;  %v3341_v24 = vand.u32 4294901760, %v7672_v11  ;;  %vm4457_vm4 = vcmp.eq.s32.totalorder %v7036_v4, %v4455_v51 }
 0xa04   :  { %5746 = vmatprep.mubr.msk.f32.mxu1 %vm6784_vm0, %v6783_v0  ;;  %5913 = vmatprep.mubr.msk.f32.mxu0 %vm6784_vm0, %v6783_v0 }
 0xa05   :  { %v3342_v32 = vsub.f32 %v7672_v11, %v3341_v24 }
 0xa06   :  { %6279 = vmatpush3.bf16.msk.msra.mxu0 %vm7251_vm12, %v6785_v44  ;;  %6201 = vmatpush3.bf16.msra.mxu1 %v7138_v46 }
 0xa07   :  { %6280 = vmatprep.subr.bf16.mxu0 %v6787_v39  ;;  %6202 = vmatprep.subr.bf16.mxu1 %v6787_v39  ;;  %v3343_v23 = vand.u32 4294901760, %v3342_v32 }
 0xa09   :  { %5747 = vmatmul.mubr.f32.vlgmr.msra.gmra.mrb[28].mxu1 %v2854_v62  ;;  %5914 = vmatmul.mubr.f32.vlgmr.msra.gmra.mrb[20].mxu0 %v3968_v52 }
 0xa0a   :  { %6282 = vmatpush3.bf16.msra.mxu0 %v7276_v36  ;;  %6204 = vmatpush3.bf16.msk.msra.mxu1 %vm7064_vm14, %v6785_v44  ;;  %v2690_v36 = vsel %vm7608_vm6, 1.0, %v6783_v0 }
 0xa0b   :  { %6283 = vmatprep.subr.bf16.mxu0 %v6787_v39  ;;  %6205 = vmatprep.subr.bf16.mxu1 %v6787_v39 }
 0xa0c   :  { %5757 = vmatprep.mubr.msk.f32.mxu1 %vm6784_vm0, %v6783_v0  ;;  %5924 = vmatprep.mubr.msk.f32.mxu0 %vm6784_vm0, %v6783_v0 }
 0xa0e   :  { %6285 = vmatpush3.bf16.msra.mxu0 %v7316_v19  ;;  %6207 = vmatpush3.bf16.msk.msra.mxu1 %vm7134_vm7, %v6785_v44  ;;  %v7653_v19 = vsub.f32 %v2690_v36, %v2690_v36 }
 0xa0f   :  { %6286 = vmatprep.subr.bf16.mxu0 %v6787_v39  ;;  %6208 = vmatprep.subr.bf16.mxu1 %v6787_v39 }
 0xa10   :  { %v3335_v14 = vand.u32 4294901760, %v7653_v19 }
 0xa11   :  { %5758 = vmatmul.mubr.f32.vlgmr.msra.gmra.mrb[28].mxu1 %v2855_v63  ;;  %5925 = vmatmul.mubr.f32.vlgmr.msra.gmra.mrb[20].mxu0 %v7528_v48 }
 0xa12   :  { %6288 = vmatpush3.bf16.msk.msra.mxu0 %vm7224_vm13, %v6785_v44  ;;  %6210 = vmatpush3.bf16.msra.mxu1 %v7171_v8  ;;  %vm7641_vm13 = vmand %vm2679_vm15, %vm7589_vm9  ;;  %v3336_v20 = vsub.f32 %v7653_v19, %v3335_v14  ;;  %v6245_v49 = vpack.c.bf16 %v3335_v14, %v3329_v13  ;;  %vm4456_vm9 = vcmp.eq.s32.totalorder %v7031_v2, %v4455_v51 }
 0xa13   :  { %6289 = vmatprep.subr.bf16.mxu0 %v6787_v39  ;;  %6211 = vmatprep.subr.bf16.mxu1 %v6787_v39  ;;  %v2692_v9 = vsel %vm7641_vm13, 1.0, %v6783_v0 }
 0xa14   :  { %5768 = vmatprep.mubr.msk.f32.mxu1 %vm6784_vm0, %v6783_v0  ;;  %5935 = vmatprep.mubr.msk.f32.mxu0 %vm6784_vm0, %v6783_v0  ;;  %v3346_v12 = vsub.f32 %v2692_v9, %v2692_v9  ;;  %v3337_v31 = vand.u32 4294901760, %v3336_v20 }
 0xa16   :  { %6291 = vmatpush3.bf16.msk.msra.mxu0 %vm7251_vm12, %v6785_v44  ;;  %6213 = vmatpush3.bf16.msra.mxu1 %v7147_v47  ;;  %v4368_v47 = vpop.permute.xlu1 %4367  ;;  %v3347_v25 = vand.u32 4294901760, %v3346_v12  ;;  %vm4460_vm12 = vcmp.lt.s32.totalorder %v7033_v3, 14 }
 0xa17   :  { %5938 = vmatprep.subr.bf16.mxu0 %v6783_v0  ;;  %6214 = vmatprep.subr.bf16.mxu1 %v6787_v39 }
 0xa18   :  { %v3348_v33 = vsub.f32 %v3346_v12, %v3347_v25  ;;  %v6248_v50 = vpack.c.bf16 %v3347_v25, %v3341_v24 }
 0xa19   :  { %5769 = vmatmul.mubr.f32.vlgmr.msra.gmra.mrb[28].mxu1 %v7532_v58  ;;  %5936 = vmatmul.mubr.f32.vlgmr.msra.gmra.mrb[20].mxu0 %v7528_v48  ;;  %v6233_v48 = vpack.c.bf16 %v7653_v19, %v7651_v18 }
 0xa1a   :  { %5939 = vmatpush3.bf16.msra.mxu0 %v7374_v60  ;;  %6216 = vmatpush3.bf16.msk.msra.mxu1 %vm7064_vm14, %v6785_v44  ;;  %v3330_v60 = vsub.f32 %v7651_v18, %v3329_v13  ;;  %vm7716_vm14 = vmpackc.low %vm7641_vm13, %vm7631_vm3  ;;  %v3349_v40 = vand.u32 4294901760, %v3348_v33  ;;  %vm4458_vm3 = vcmp.eq.s32.totalorder %v7090_v28, %v4455_v51  ;;  %vm4459_vm13 = vcmp.eq.s32.totalorder %v7093_v29, %v4455_v51 }
 0xa1b   :  { %5940 = vmatprep.mubr.msk.bf16.mxu0 %vm6784_vm0, %v6783_v0  ;;  %5944 = vmatprep.subr.bf16.mxu0 %v6783_v0 }
 0xa1c   :  { %6217 = vmatprep.subr.bf16.mxu1 %v6787_v39  ;;  %5779 = vmatprep.mubr.msk.f32.mxu1 %vm6784_vm0, %v6783_v0  ;;  %v6230_v41 = vpack.c.bf16 %v3349_v40, %v3343_v23  ;;  %v4953_v40 = vld [vmem:[#allocation20] sm:$0xff] }
 0xa1d   :  { %5941 = vmatmul.mubr.msk.bf16.vlgmr.msra.gmra.mrb[24].mxu0 %vm197_vm11, %v4368_v47  ;;  %vm7696_vm11 = vmpackc.low %vm7608_vm6, %vm7602_vm5 }
 0xa1e   :  { %5945 = vmatpush3.bf16.msra.mxu0 %v7472_v22  ;;  %6219 = vmatpush3.bf16.msk.msra.mxu1 %vm7134_vm7, %v6785_v44  ;;  %v3331_v22 = vand.u32 4294901760, %v3330_v60  ;;  %vm4462_vm7 = vcmp.lt.s32.totalorder %v7033_v3, 30 }
 0xa1f   :  { %6220 = vmatprep.subr.bf16.mxu1 %v6787_v39  ;;  %5946 = vmatprep.mubr.msk.bf16.mxu0 %vm6784_vm0, %v6783_v0 }
 0xa20   :  { %6292 = vmatprep.subr.bf16.mxu0 %v6787_v39  ;;  %v6227_v10 = vpack.c.bf16 %v3337_v31, %v3331_v22 }
 0xa21   :  { %5780 = vmatmul.mubr.f32.vlgmr.msra.gmra.mrb[28].mxu1 %v7532_v58 }
 0xa22   :  { %6222 = vmatpush3.bf16.msk.msra.mxu1 %vm7696_vm11, %v6785_v44  ;;  %5790 = vmatprep.mubr.msk.f32.mxu1 %vm6784_vm0, %v6783_v0 }
 0xa23   :  { %6223 = vmatprep.subr.bf16.mxu1 %v6787_v39 }
 0xa26   :  { %6225 = vmatpush3.bf16.msk.msra.mxu1 %vm7716_vm14, %v6785_v44 }
 0xa27   :  { %6226 = vmatprep.subr.bf16.mxu1 %v6787_v39 }
 0xa29   :  { %5791 = vmatmul.mubr.f32.vlgmr.msra.gmra.mrb[28].mxu1 %v3321_v38  ;;  %5947 = vmatmul.mubr.msk.bf16.vlgmr.msra.gmra.mrb[24].mxu0 %vm2627_vm1, %v7466_v5  ;;  %v6236_v5 = vpack.c.bf16 %v3346_v12, %v7672_v11  ;;  %vm7898_vm1 = vcmp.ge.s32.totalorder %v7033_v3, 16 }
 0xa2a   :  { %6228 = vmatpush3.bf16.msra.mxu1 %v6227_v10  ;;  %5801 = vmatprep.mubr.msk.f32.mxu1 %vm6784_vm0, %v6783_v0  ;;  %vm4463_vm2 = vmand %vm7898_vm1, %vm4462_vm7 }
 0xa2b   :  { %6229 = vmatprep.subr.bf16.mxu1 %v6787_v39  ;;  %5958 = vmatprep.mubr.msk.f32.mxu0 %vm6784_vm0, %v6783_v0  ;;  %vm4464_vm5 = vmor %vm4460_vm12, %vm4463_vm2 }
 0xa2c   :  { %vm4465_vm6 = vmand %vm4456_vm9, %vm4464_vm5 }
 0xa2d   :  { %vm4466_vm10 = vmand %vm4457_vm4, %vm4464_vm5  ;;  %v4469_v52 = vsel %vm4465_vm6, 1.0, %v6783_v0 }
 0xa2e   :  { %6231 = vmatpush3.bf16.msra.mxu1 %v6230_v41  ;;  %v4470_v53 = vsel %vm4466_vm10, 1.0, %v6783_v0  ;;  %v4552_v54 = vsub.f32 %v4469_v52, %v4469_v52  ;;  %vm7775_vm15 = vmpackc.low %vm4466_vm10, %vm4465_vm6 }
 0xa2f   :  { %6232 = vmatprep.subr.bf16.mxu1 %v6787_v39  ;;  %v4558_v56 = vsub.f32 %v4470_v53, %v4470_v53  ;;  %6294 = vmatpush3.bf16.msk.msra.mxu0 %vm7775_vm15, %v6785_v44 }
 0xa30   :  { %v4553_v2 = vand.u32 4294901760, %v4552_v54  ;;  %6295 = vmatprep.subr.bf16.mxu0 %v6787_v39 }
 0xa31   :  { %5802 = vmatmul.mubr.f32.vlgmr.msra.gmra.mrb[28].mxu1 %v7645_v17  ;;  %v4559_v4 = vand.u32 4294901760, %v4558_v56  ;;  %v6305_v36 = vpack.c.bf16 %v4558_v56, %v4552_v54 }
 0xa32   :  { %6234 = vmatpush3.bf16.msra.mxu1 %v6233_v48  ;;  %5812 = vmatprep.mubr.msk.f32.mxu1 %vm6784_vm0, %v6783_v0  ;;  %v4554_v59 = vsub.f32 %v4552_v54, %v4553_v2 }
 0xa33   :  { %6235 = vmatprep.subr.bf16.mxu1 %v6787_v39  ;;  %v4560_v61 = vsub.f32 %v4558_v56, %v4559_v4  ;;  %v6317_v8 = vpack.c.bf16 %v4559_v4, %v4553_v2 }
 0xa34   :  { %v4555_v62 = vand.u32 4294901760, %v4554_v59 }
 0xa35   :  { %v4561_v1 = vand.u32 4294901760, %v4560_v61 }
 0xa36   :  { %6237 = vmatpush3.bf16.msra.mxu1 %v6236_v5  ;;  %v4970_v5 = vld [vmem:[#allocation7] sm:$0x3f] }
 0xa37   :  { %6238 = vmatprep.subr.bf16.mxu1 %v6787_v39  ;;  %v6299_v42 = vpack.c.bf16 %v4561_v1, %v4555_v62 }
 0xa39   :  { %5813 = vmatmul.mubr.f32.vlgmr.msra.gmra.mrb[28].mxu1 %v7664_v21 }
 0xa3a   :  { %6240 = vmatpush3.bf16.msk.msra.mxu1 %vm7696_vm11, %v6785_v44  ;;  %5823 = vmatprep.mubr.msk.f32.mxu1 %vm6784_vm0, %v6783_v0 }
 0xa3b   :  { %6241 = vmatprep.subr.bf16.mxu1 %v6787_v39 }
 0xa3e   :  { %6243 = vmatpush3.bf16.msk.msra.mxu1 %vm7716_vm14, %v6785_v44 }
 0xa3f   :  { %6244 = vmatprep.subr.bf16.mxu1 %v6787_v39 }
 0xa41   :  { %5824 = vmatmul.mubr.f32.vlgmr.msra.gmra.mrb[28].mxu1 %v3319_v15 }
 0xa42   :  { %6246 = vmatpush3.bf16.msra.mxu1 %v6245_v49  ;;  %5834 = vmatprep.mubr.msk.f32.mxu1 %vm6784_vm0, %v6783_v0 }
 0xa43   :  { %6247 = vmatprep.subr.bf16.mxu1 %v6787_v39 }
 0xa46   :  { %6249 = vmatpush3.bf16.msra.mxu1 %v6248_v50 }
 0xa47   :  { %6250 = vmatprep.subr.bf16.mxu1 %v6787_v39 }
 0xa49   :  { %5835 = vmatmul.mubr.f32.vlgmr.msra.gmra.mrb[28].mxu1 %v7645_v17 }
 0xa4a   :  { %6252 = vmatpush3.bf16.msk.msra.mxu1 %vm7696_vm11, %v6785_v44  ;;  %5845 = vmatprep.mubr.msk.f32.mxu1 %vm6784_vm0, %v6783_v0  ;;  %vm4467_vm11 = vmand %vm4458_vm3, %vm4464_vm5 }
 0xa4b   :  { %6253 = vmatprep.subr.bf16.mxu1 %v6787_v39  ;;  %v4471_v3 = vsel %vm4467_vm11, 1.0, %v6783_v0 }
 0xa4c   :  { %v4564_v58 = vsub.f32 %v4471_v3, %v4471_v3 }
 0xa4e   :  { %6255 = vmatpush3.bf16.msk.msra.mxu1 %vm7716_vm14, %v6785_v44  ;;  %vm4468_vm14 = vmand %vm4459_vm13, %vm4464_vm5  ;;  %v4565_v63 = vand.u32 4294901760, %v4564_v58 }
 0xa4f   :  { %v4472_v57 = vsel %vm4468_vm14, 1.0, %v6783_v0  ;;  %vm7787_vm7 = vmpackc.low %vm4468_vm14, %vm4467_vm11 }
 0xa50   :  { %v4570_v29 = vsub.f32 %v4472_v57, %v4472_v57  ;;  %6297 = vmatpush3.bf16.msk.msra.mxu0 %vm7787_vm7, %v6785_v44  ;;  %v4566_v27 = vsub.f32 %v4564_v58, %v4565_v63 }
 0xa51   :  { %5846 = vmatmul.mubr.f32.vlgmr.msra.gmra.mrb[28].mxu1 %v7645_v17  ;;  %6298 = vmatprep.subr.bf16.mxu0 %v6787_v39 }
 0xa52   :  { %v4571_v6 = vand.u32 4294901760, %v4570_v29  ;;  %v4567_v46 = vand.u32 4294901760, %v4566_v27  ;;  %v6308_v16 = vpack.c.bf16 %v4570_v29, %v4564_v58 }
 0xa54   :  { %v4572_v43 = vsub.f32 %v4570_v29, %v4571_v6  ;;  %v6320_v17 = vpack.c.bf16 %v4571_v6, %v4565_v63 }
 0xa56   :  { %v4573_v34 = vand.u32 4294901760, %v4572_v43 }
 0xa58   :  { %v6302_v35 = vpack.c.bf16 %v4573_v34, %v4567_v46 }
 0xafc   :  { %v4449_v18 = vpop.f32.mrb[24].mxu0 }
 0xafd   :  { %v4474_v19 = vsel %vm321_vm8, %v4449_v18, 0  ;;  %v5948_v7 = vpop.f32.mrb[25].mxu0 }
 0xafe   :  { %v4541_v9 = vand.u32 4294901760, %v4474_v19  ;;  %v4452_v21 = vpop.f32.mrb[26].mxu0 }
 0xaff   :  { %v5949_v47 = vpop.f32.mrb[27].mxu0 }
 0xb00   :  { %v4542_v11 = vsub.f32 %v4474_v19, %v4541_v9 }
 0xb02   :  { %v4543_v12 = vand.u32 4294901760, %v4542_v11 }
 0xb04   :  { %v4544_v13 = vsub.f32 %v4542_v11, %v4543_v12 }
 0xb06   :  { %v4545_v14 = vand.u32 4294901760, %v4544_v13 }
 0xb08   :  { %5959 = vmatmul.mubr.f32.vlgmr.msra.gmra.mrb[20].mxu0 %v4545_v14 }
 0xb09   :  { %6300 = vmatpush3.bf16.msra.mxu0 %v6299_v42  ;;  %5969 = vmatprep.mubr.msk.f32.mxu0 %vm6784_vm0, %v6783_v0 }
 0xb0a   :  { %6301 = vmatprep.subr.bf16.mxu0 %v6787_v39 }
 0xb0d   :  { %6303 = vmatpush3.bf16.msra.mxu0 %v6302_v35 }
 0xb0e   :  { %6304 = vmatprep.subr.bf16.mxu0 %v6787_v39 }
 0xb10   :  { %5970 = vmatmul.mubr.f32.vlgmr.msra.gmra.mrb[20].mxu0 %v4541_v9 }
 0xb11   :  { %6306 = vmatpush3.bf16.msra.mxu0 %v6305_v36  ;;  %5980 = vmatprep.mubr.msk.f32.mxu0 %vm6784_vm0, %v6783_v0 }
 0xb12   :  { %6307 = vmatprep.subr.bf16.mxu0 %v6787_v39 }
 0xb15   :  { %6309 = vmatpush3.bf16.msra.mxu0 %v6308_v16 }
 0xb16   :  { %6310 = vmatprep.subr.bf16.mxu0 %v6787_v39 }
 0xb18   :  { %5981 = vmatmul.mubr.f32.vlgmr.msra.gmra.mrb[20].mxu0 %v4542_v11 }
 0xb19   :  { %6312 = vmatpush3.bf16.msk.msra.mxu0 %vm7775_vm15, %v6785_v44  ;;  %5991 = vmatprep.mubr.msk.f32.mxu0 %vm6784_vm0, %v6783_v0 }
 0xb1a   :  { %6313 = vmatprep.subr.bf16.mxu0 %v6787_v39 }
 0xb1d   :  { %6315 = vmatpush3.bf16.msk.msra.mxu0 %vm7787_vm7, %v6785_v44 }
 0xb1e   :  { %6316 = vmatprep.subr.bf16.mxu0 %v6787_v39 }
 0xb20   :  { %5992 = vmatmul.mubr.f32.vlgmr.msra.gmra.mrb[20].mxu0 %v4543_v12 }
 0xb21   :  { %6318 = vmatpush3.bf16.msra.mxu0 %v6317_v8  ;;  %6002 = vmatprep.mubr.msk.f32.mxu0 %vm6784_vm0, %v6783_v0 }
 0xb22   :  { %6319 = vmatprep.subr.bf16.mxu0 %v6787_v39 }
 0xb24   :  { %v3709_v15 = vpop.f32.mrb[28].mxu1 }
 0xb25   :  { %v3805_v60 = vadd.f32 %v7523_v26, %v3709_v15  ;;  %6321 = vmatpush3.bf16.msra.mxu0 %v6320_v17  ;;  %v5847_v20 = vpop.f32.mrb[29].mxu1 }
 0xb26   :  { %6322 = vmatprep.subr.bf16.mxu0 %v6787_v39 }
 0xb28   :  { %6003 = vmatmul.mubr.f32.vlgmr.msra.gmra.mrb[20].mxu0 %v4541_v9 }
 0xb29   :  { %6324 = vmatpush3.bf16.msk.msra.mxu0 %vm7775_vm15, %v6785_v44  ;;  %6013 = vmatprep.mubr.msk.f32.mxu0 %vm6784_vm0, %v6783_v0  ;;  %vm4971_vm0 = vcmask 259072  }
 0xb2a   :  { %6325 = vmatprep.subr.bf16.mxu0 %v6787_v39  ;;  %4972 = vst.msk [vmem:[#allocation22 + $0x8] sm:$0x3f] %vm4971_vm0, %v4970_v5 }
 0xb2d   :  { %6327 = vmatpush3.bf16.msk.msra.mxu0 %vm7787_vm7, %v6785_v44  ;;  %v4949_v44 = vld [vmem:[#allocation19] sm:$0xff] }
 0xb30   :  { %6014 = vmatmul.mubr.f32.vlgmr.msra.gmra.mrb[20].mxu0 %v4541_v9 }
 0xc03   :  { %v4933_v26 = vpop.f32.mrb[20].mxu0 }
 0xc04   :  { %v6331_v24 = vadd.f32 %v4933_v26, %v3805_v60  ;;  %v6015_v25 = vpop.f32.mrb[21].mxu0 }
 0xc06   :  { %v4938_v30 = vsel %vm321_vm8, %v6331_v24, 0.0  ;;  %v4941_v45 = vmul.f32 %v6331_v24, %v6331_v24 }
 0xc07   :  { %4939 = vadd.xlane.f32.xlu0 %v4938_v30 }
 0xc08   :  { %v4942_v22 = vsel %vm321_vm8, %v4941_v45, 0.0 }
 0xc09   :  { %4943 = vadd.xlane.f32.xlu1 %v4942_v22 }
 0xc94   :  { %v4940_v31 = vpop.xlane.xlu0 %4939 }
 0xc95   :  { %v4945_v32 = vmul.f32 0.03125, %v4940_v31 }
 0xc96   :  { %v4944_v0 = vpop.xlane.xlu1 %4943 }
 0xc97   :  { %v4947_v33 = vmul.f32 %v4945_v32, %v4945_v32  ;;  %v4946_v39 = vmul.f32 0.03125, %v4944_v0 }
 0xc99   :  { %v4948_v37 = vsub.f32 %v4946_v39, %v4947_v33 }
 0xc9b   :  { %v4950_v38 = vadd.f32 1e-05, %v4948_v37 }
 0xc9d   :  { %6465 = vrsqrt.f32 %v4950_v38 }
 0xca7   :  { %v6466_v10 = vpop.eup %6465 }
 0xca8   :  { %v4952_v23 = vmul.f32 %v6466_v10, %v4949_v44 }
 0xcaa   :  { %4958 = vperm.xlu0 %6457, %v4952_v23   ;;  %v4954_v41 = vmul.f32 %v4952_v23, %v4945_v32 }
 0xcac   :  { %v4955_v48 = vsub.f32 %v4953_v40, %v4954_v41 }
 0xcae   :  { %4964 = vperm.xlu1 %6458, %v4955_v48  }
 0xd29   :  { %v4959_v49 = vpop.permute.xlu0 %4958 }
 0xd2a   :  { %v4961_v50 = vmul.f32 %v6331_v24, %v4959_v49 }
 0xd2d   :  { %v4965_v51 = vpop.permute.xlu1 %4964 }
 0xd2e   :  { %v4967_v52 = vadd.f32 %v4965_v51, %v4961_v50 }
 0xd30   :  { %v4968_v53 = vmax.f32 %v4967_v52, 0.0 }
 0xd32   :  { %4969 = vst.msk [vmem:[#allocation22] sm:$0xff] %vm321_vm8, %v4968_v53 }
 0xd33   :  { %6742 = shalt.err (!%p6739_p2)
}
 0xd34   :  { %s6743_s24 = scalar_lea.hbm %s7858_s12, 256 }
 0xd35   :  { %p6744_p3 = scmp.ne.s32.totalorder %s7858_s12, %s6743_s24  ;;  %p6747_p4 = scmp.lt.u32.totalorder %s6743_s24, %s7858_s12 }
 0xd37   :  { %p6749_p5 = pnand %p6747_p4, %p6744_p3 }
 0xd39   :  { %6752 = shalt.err (!%p6749_p5)
}
 0xd3a   :  { %4984 = dma.vmem_to_hbm [thread:$0]  %s4979_s6, 256, %s7858_s12, [#allocation4], %s6771_s1, %s6771_s1, %s6772_s22  }
 0xd3b   :  { %6767 = dma.done.wait [#allocation4], 256  }
 0xd3c   :  { %6768 = vsyncadd [#allocation4], 4294967040 }
 0xd3d   :  { %4988 = vsyncpa [#allocation3], 1 }
 0xd3e   :  { %4989 = vsyncpa [#allocation6], 1 }
 0xd3f   :  { %4990 = vsyncpa [#allocation9], 1 }
 0xd40   :  { %4991 = vsyncpa [#allocation12], 1 }
 0xd41   :  { %4992 = vsyncpa [#allocation15], 1 }
 0xd42   :  { %4993 = vsyncpa [#allocation18], 1 }
 0xd43   :  { %4994 = vsyncpa [#allocation21], 1 }
 0xd44   :  { %4995 = vsyncpa [#allocation4], 1 }

</bundles_post_ra>
